<compile_context>
chip_gen: v7x
topology: tpu7x:2x2x1
jax: 0.10.0
libtpu: 0.0.40
codegen_flags: <defaults>
</compile_context>

<pallas_src>
from functools import partial

import jax
import jax.numpy as jnp
from jax.experimental import pallas as pl
from jax.experimental.pallas import tpu as pltpu

STATE_SIZE = 2      # num_inputs of DQN / state_size of Actor
HIDDEN = 128        # DQN hidden width
NUM_ACTIONS = 2     # DQN num_actions == number of base actors
FC1_UNITS = 25      # actor hidden width
PAD = 128           # lane width

# Row layout of the packed (SLAB_ROWS, 128) f32 weight slab.
ROW_DQN_W1_0 = 0    # dqn fc1 weights, input dim 0
ROW_DQN_W1_1 = 1    # dqn fc1 weights, input dim 1
ROW_DQN_B1 = 2      # dqn fc1 bias
ROW_DQN_B2 = 3      # dqn fc2 bias
ROW_DQN_DW3 = 4     # dqn_w3[:, 0] - dqn_w3[:, 1]   (folded 128->2 head)
ROW_ACT_W1_0 = 5    # both actors' fc1 weights (input dim 0), lanes 25*i : 25*i+25
ROW_ACT_W1_1 = 6    # both actors' fc1 weights (input dim 1)
ROW_ACT_B1 = 7      # both actors' fc1 bias (fused lanes)
ROW_ACT_W2_0 = 8    # actor 0 fc2 weights in lanes 0:25
ROW_ACT_W2_1 = 9    # actor 1 fc2 weights in lanes 25:50
SLAB_ROWS = 16      # padded to a multiple of 8 sublanes


def _switch_kernel(states_ref,   # VMEM (tile_b, 2) f32
                   scal_ref,     # SMEM (4,) f32: [b3_0 - b3_1, actor_b2_0, actor_b2_1, 0]
                   slab_ref,     # VMEM (16, 128) f32: packed small weights (see ROW_*)
                   w2_ref,       # VMEM (128, 128) bf16: dqn fc2 weight (the MXU matmul)
                   out_ref):     # VMEM (tile_b, 1) f32
    x0 = states_ref[:, 0:1]      # (tile_b, 1)
    x1 = states_ref[:, 1:2]

    # ---- DQN fc1 (2 -> 128): two rank-1 VPU FMAs (column x row broadcast) ----
    h1 = jnp.maximum(
        x0 * slab_ref[ROW_DQN_W1_0:ROW_DQN_W1_0 + 1, :]
        + x1 * slab_ref[ROW_DQN_W1_1:ROW_DQN_W1_1 + 1, :]
        + slab_ref[ROW_DQN_B1:ROW_DQN_B1 + 1, :], 0.0)                 # (tile_b, 128) f32

    # ---- DQN fc2 (128 -> 128): the MXU matmul, bf16 operands, f32 accumulate -
    h2 = jnp.maximum(
        jnp.dot(h1.astype(jnp.bfloat16), w2_ref[...],
                preferred_element_type=jnp.float32)
        + slab_ref[ROW_DQN_B2:ROW_DQN_B2 + 1, :], 0.0)                 # (tile_b, 128) f32

    # ---- DQN head + 2-way softmax folded to one lane reduction --------------
    # softmax(q)[0] = sigmoid(q0 - q1); only the logit difference is needed.
    dq = (jnp.sum(h2 * slab_ref[ROW_DQN_DW3:ROW_DQN_DW3 + 1, :],
                  axis=-1, keepdims=True) + scal_ref[0])               # (tile_b, 1)
    p0 = 1.0 / (1.0 + jnp.exp(-dq))

    # ---- both actors fused: actor i's fc1 lives in lanes [25*i, 25*i+25) ----
    # Padded lanes of a1 are exactly 0 (zero weights + zero bias), so the full
    # lane reduction against the lane-disjoint fc2 rows gives each actor's dot.
    a1 = jnp.maximum(
        x0 * slab_ref[ROW_ACT_W1_0:ROW_ACT_W1_0 + 1, :]
        + x1 * slab_ref[ROW_ACT_W1_1:ROW_ACT_W1_1 + 1, :]
        + slab_ref[ROW_ACT_B1:ROW_ACT_B1 + 1, :], 0.0)                 # (tile_b, 128)
    act0 = jnp.tanh(jnp.sum(a1 * slab_ref[ROW_ACT_W2_0:ROW_ACT_W2_0 + 1, :],
                            axis=-1, keepdims=True) + scal_ref[1])     # (tile_b, 1)
    act1 = jnp.tanh(jnp.sum(a1 * slab_ref[ROW_ACT_W2_1:ROW_ACT_W2_1 + 1, :],
                            axis=-1, keepdims=True) + scal_ref[2])     # (tile_b, 1)

    out_ref[...] = p0 * act0 + (1.0 - p0) * act1                       # (tile_b, 1)


def pack_params(params):
    """One-time packing of weights into TPU-tile-friendly blocks (off the hot path)."""
    f32 = jnp.float32
    # Correctness guards: the unmasked lane reductions rely on these.
    assert HIDDEN == PAD, "lane reductions assume HIDDEN == 128"
    assert NUM_ACTIONS * FC1_UNITS <= PAD, "fused actors must fit in 128 lanes"

    slab = jnp.zeros((SLAB_ROWS, PAD), f32)
    slab = slab.at[ROW_DQN_W1_0:ROW_DQN_W1_1 + 1, :HIDDEN].set(
        jnp.asarray(params["dqn_w1"], f32))
    slab = slab.at[ROW_DQN_B1, :HIDDEN].set(jnp.asarray(params["dqn_b1"], f32))
    slab = slab.at[ROW_DQN_B2, :HIDDEN].set(jnp.asarray(params["dqn_b2"], f32))
    w3 = jnp.asarray(params["dqn_w3"], f32)                            # (128, 2)
    slab = slab.at[ROW_DQN_DW3, :HIDDEN].set(w3[:, 0] - w3[:, 1])
    for i in range(NUM_ACTIONS):
        lo = i * FC1_UNITS
        slab = slab.at[ROW_ACT_W1_0:ROW_ACT_W1_1 + 1, lo:lo + FC1_UNITS].set(
            jnp.asarray(params["actor_w1"][i], f32))
        slab = slab.at[ROW_ACT_B1, lo:lo + FC1_UNITS].set(
            jnp.asarray(params["actor_b1"][i], f32))
        slab = slab.at[ROW_ACT_W2_0 + i, lo:lo + FC1_UNITS].set(
            jnp.asarray(params["actor_w2"][i][:, 0], f32))

    # bf16 MXU operand (halves the 64 KiB weight stream; f32 accumulate keeps
    # accuracy).  Change to `f32` here if full f32 matmul precision is needed.
    w2 = jnp.asarray(params["dqn_w2"], f32).astype(jnp.bfloat16)       # (128, 128)

    b3 = jnp.asarray(params["dqn_b3"], f32).reshape(-1)
    ab2 = jnp.asarray(params["actor_b2"], f32).reshape(-1)
    scal = jnp.stack([b3[0] - b3[1], ab2[0], ab2[1], jnp.float32(0.0)])  # (4,)

    return {"slab": slab, "w2": w2, "scal": scal}


@partial(jax.jit, static_argnames=("tile_b",))
def switch_controller_forward(states, packed, *, tile_b=256):
    """states: (B, 2) (or (2,)) float32; packed: pack_params output -> (B,) (or scalar).

    tile_b: batch-tile rows per grid step.  256 fills the v6e/v7x MXU; use 128
    on v5e.  Must be a multiple of 8.
    """
    assert tile_b % 8 == 0
    states = jnp.asarray(states, jnp.float32)
    single = states.ndim == 1
    states = states.reshape(-1, STATE_SIZE)
    b = states.shape[0]
    n_tiles = max(1, pl.cdiv(b, tile_b))
    bpad = n_tiles * tile_b
    if bpad != b:
        states = jnp.pad(states, ((0, bpad - b), (0, 0)))

    out = pl.pallas_call(
        _switch_kernel,
        out_shape=jax.ShapeDtypeStruct((bpad, 1), jnp.float32),
        grid_spec=pltpu.PrefetchScalarGridSpec(
            num_scalar_prefetch=0,
            grid=(n_tiles,),
            in_specs=[
                pl.BlockSpec((tile_b, STATE_SIZE), lambda i: (i, 0)),   # states tile
                pl.BlockSpec(memory_space=pltpu.MemorySpace.SMEM),      # scalar biases
                pl.BlockSpec((SLAB_ROWS, PAD), lambda i: (0, 0)),       # weight slab (resident)
                pl.BlockSpec((PAD, PAD), lambda i: (0, 0)),             # dqn_w2 (resident)
            ],
            out_specs=pl.BlockSpec((tile_b, 1), lambda i: (i, 0)),
        ),
        compiler_params=pltpu.CompilerParams(
            dimension_semantics=("parallel",)),                         # v7x megacore split
    )(states, packed["scal"], packed["slab"], packed["w2"])

    out = out[:b, 0]
    return out[0] if single else out


def reference_forward(states, params, *, match_kernel_precision=True):
    """Pure-JAX reference of the soft_choice forward, batched over states (B,2)."""
    relu = lambda v: jnp.maximum(v, 0.0)
    with jax.default_matmul_precision("float32"):
        h1 = relu(states @ params["dqn_w1"] + params["dqn_b1"])
        w2 = jnp.asarray(params["dqn_w2"], jnp.float32)
        if match_kernel_precision:
            # Match the kernel's bf16 MXU operands (f32 accumulation).
            h1 = h1.astype(jnp.bfloat16).astype(jnp.float32)
            w2 = w2.astype(jnp.bfloat16).astype(jnp.float32)
        h2 = relu(h1 @ w2 + params["dqn_b2"])
        q = h2 @ params["dqn_w3"] + params["dqn_b3"]
        p = jax.nn.softmax(q, axis=-1)                                  # (B, 2)
        acts = []
        for i in range(NUM_ACTIONS):
            a = relu(states @ params["actor_w1"][i] + params["actor_b1"][i])
            a = jnp.tanh(a @ params["actor_w2"][i] + params["actor_b2"][i])
            acts.append(a[:, 0])
        acts = jnp.stack(acts, axis=-1)                                 # (B, 2)
        return jnp.sum(p * acts, axis=-1)                               # (B,)


def make_params(key):
    ks = jax.random.split(key, 10)
    s = 0.1
    return {
        # DQN(2, 2): Linear(2,128) / Linear(128,128) / Linear(128,2), (in,out) layout
        "dqn_w1": s * jax.random.normal(ks[0], (STATE_SIZE, HIDDEN), jnp.float32),
        "dqn_b1": s * jax.random.normal(ks[1], (HIDDEN,), jnp.float32),
        "dqn_w2": s * jax.random.normal(ks[2], (HIDDEN, HIDDEN), jnp.float32),
        "dqn_b2": s * jax.random.normal(ks[3], (HIDDEN,), jnp.float32),
        "dqn_w3": s * jax.random.normal(ks[4], (HIDDEN, NUM_ACTIONS), jnp.float32),
        "dqn_b3": s * jax.random.normal(ks[5], (NUM_ACTIONS,), jnp.float32),
        # Two Actor(2, 1, fc1_units=25) models, stacked on a leading actor axis
        "actor_w1": s * jax.random.normal(ks[6], (NUM_ACTIONS, STATE_SIZE, FC1_UNITS), jnp.float32),
        "actor_b1": s * jax.random.normal(ks[7], (NUM_ACTIONS, FC1_UNITS), jnp.float32),
        "actor_w2": s * jax.random.normal(ks[8], (NUM_ACTIONS, FC1_UNITS, 1), jnp.float32),
        "actor_b2": s * jax.random.normal(ks[9], (NUM_ACTIONS, 1), jnp.float32),
    }


if __name__ == "__main__":
    key = jax.random.PRNGKey(0)
    pkey, skey = jax.random.split(key)
    params = make_params(pkey)

    B = 24
    states = jax.random.normal(skey, (B, STATE_SIZE), jnp.float32)

    packed = pack_params(params)           # one-time weight packing (off the hot path)
    packed = jax.tree_util.tree_map(jax.block_until_ready, packed)

    ref = jax.block_until_ready(reference_forward(states, params))

    # Default 256-row batch tile (fills the v6e/v7x MXU; single grid step here).
    out_big = jax.block_until_ready(switch_controller_forward(states, packed, tile_b=256))
    # Small tile to exercise a multi-tile grid (3 steps) at this small batch.
    out_small = jax.block_until_ready(switch_controller_forward(states, packed, tile_b=8))

    assert out_big.shape == (B,) and out_small.shape == (B,)
    assert jnp.allclose(out_big, ref, atol=1e-4, rtol=1e-4), (out_big, ref)
    assert jnp.allclose(out_small, ref, atol=1e-4, rtol=1e-4), (out_small, ref)
    print("KERNEL_OK")
</pallas_src>

<mosaic_0001>
module attributes {stable_mosaic.version = 11 : i64} {
  func.func @_switch_kernel(%arg0: i32, %arg1: memref<256x2xf32, #tpu.memory_space<vmem>>, %arg2: memref<4xf32, #tpu.memory_space<smem>>, %arg3: memref<16x128xf32, #tpu.memory_space<vmem>>, %arg4: memref<128x128xbf16, #tpu.memory_space<vmem>>, %arg5: memref<256x1xf32, #tpu.memory_space<vmem>>) attributes {dimension_semantics = [#tpu.dimension_semantics<parallel>], iteration_bounds = array<i64: 1>, scalar_prefetch = 0 : i64, scratch_operands = 0 : i64, tpu.core_type = #tpu.core_type<tc>, window_params = [{transform_indices = @transform_0, window_bounds = array<i64: 256, 2>}, {transform_indices = @transform_1, window_bounds = array<i64: 4>}, {pipeline_mode = #tpu.pipeline_mode<synchronous>, transform_indices = @transform_2, window_bounds = array<i64: 16, 128>}, {pipeline_mode = #tpu.pipeline_mode<synchronous>, transform_indices = @transform_3, window_bounds = array<i64: 128, 128>}, {transform_indices = @transform_4, window_bounds = array<i64: 256, 1>}]} {
    %c0 = arith.constant 0 : index
    %c0_0 = arith.constant 0 : index
    %0 = vector.load %arg1[%c0, %c0_0] : memref<256x2xf32, #tpu.memory_space<vmem>>, vector<256x1xf32>
    %c0_1 = arith.constant 0 : index
    %c1 = arith.constant 1 : index
    %1 = vector.load %arg1[%c0_1, %c1] : memref<256x2xf32, #tpu.memory_space<vmem>>, vector<256x1xf32>
    %c0_2 = arith.constant 0 : index
    %c0_3 = arith.constant 0 : index
    %2 = vector.load %arg3[%c0_2, %c0_3] : memref<16x128xf32, #tpu.memory_space<vmem>>, vector<1x128xf32>
    %3 = vector.broadcast %0 : vector<256x1xf32> to vector<256x128xf32>
    %4 = vector.broadcast %2 : vector<1x128xf32> to vector<256x128xf32>
    %5 = arith.mulf %3, %4 : vector<256x128xf32>
    %c1_4 = arith.constant 1 : index
    %c0_5 = arith.constant 0 : index
    %6 = vector.load %arg3[%c1_4, %c0_5] : memref<16x128xf32, #tpu.memory_space<vmem>>, vector<1x128xf32>
    %7 = vector.broadcast %1 : vector<256x1xf32> to vector<256x128xf32>
    %8 = vector.broadcast %6 : vector<1x128xf32> to vector<256x128xf32>
    %9 = arith.mulf %7, %8 : vector<256x128xf32>
    %10 = arith.addf %5, %9 : vector<256x128xf32>
    %c2 = arith.constant 2 : index
    %c0_6 = arith.constant 0 : index
    %11 = vector.load %arg3[%c2, %c0_6] : memref<16x128xf32, #tpu.memory_space<vmem>>, vector<1x128xf32>
    %12 = vector.broadcast %11 : vector<1x128xf32> to vector<256x128xf32>
    %13 = arith.addf %10, %12 : vector<256x128xf32>
    %cst = arith.constant 0.000000e+00 : f32
    %14 = vector.broadcast %cst : f32 to vector<256x128xf32>
    %15 = arith.maximumf %13, %14 : vector<256x128xf32>
    %16 = arith.truncf %15 : vector<256x128xf32> to vector<256x128xbf16>
    %c0_7 = arith.constant 0 : index
    %c0_8 = arith.constant 0 : index
    %17 = vector.load %arg4[%c0_7, %c0_8] : memref<128x128xbf16, #tpu.memory_space<vmem>>, vector<128x128xbf16>
    %cst_9 = arith.constant dense<0.000000e+00> : vector<256x128xf32>
    %18 = tpu.matmul %16, %17, %cst_9 {dimension_numbers = #tpu.dot_dimension_numbers<[1], [0], [0], [1], [0, 0, 1, 1], [], []>} : vector<256x128xbf16>, vector<128x128xbf16>, vector<256x128xf32> -> vector<256x128xf32>
    %c3 = arith.constant 3 : index
    %c0_10 = arith.constant 0 : index
    %19 = vector.load %arg3[%c3, %c0_10] : memref<16x128xf32, #tpu.memory_space<vmem>>, vector<1x128xf32>
    %20 = vector.broadcast %19 : vector<1x128xf32> to vector<256x128xf32>
    %21 = arith.addf %18, %20 : vector<256x128xf32>
    %cst_11 = arith.constant 0.000000e+00 : f32
    %22 = vector.broadcast %cst_11 : f32 to vector<256x128xf32>
    %23 = arith.maximumf %21, %22 : vector<256x128xf32>
    %c4 = arith.constant 4 : index
    %c0_12 = arith.constant 0 : index
    %24 = vector.load %arg3[%c4, %c0_12] : memref<16x128xf32, #tpu.memory_space<vmem>>, vector<1x128xf32>
    %25 = vector.broadcast %24 : vector<1x128xf32> to vector<256x128xf32>
    %26 = arith.mulf %23, %25 : vector<256x128xf32>
    %cst_13 = arith.constant dense<0.000000e+00> : vector<256xf32>
    %27 = vector.multi_reduction <add>, %26, %cst_13 [1] : vector<256x128xf32> to vector<256xf32>
    %28 = vector.shape_cast %27 : vector<256xf32> to vector<256x1xf32>
    %c0_14 = arith.constant 0 : index
    %29 = memref.load %arg2[%c0_14] : memref<4xf32, #tpu.memory_space<smem>>
    %30 = vector.broadcast %29 : f32 to vector<256x1xf32>
    %31 = arith.addf %28, %30 : vector<256x1xf32>
    %cst_15 = arith.constant 0.000000e+00 : f32
    %32 = vector.broadcast %cst_15 : f32 to vector<256x1xf32>
    %33 = arith.subf %32, %31 : vector<256x1xf32>
    %34 = math.exp %33 : vector<256x1xf32>
    %cst_16 = arith.constant 1.000000e+00 : f32
    %35 = vector.broadcast %cst_16 : f32 to vector<256x1xf32>
    %36 = arith.addf %35, %34 : vector<256x1xf32>
    %cst_17 = arith.constant 1.000000e+00 : f32
    %37 = vector.broadcast %cst_17 : f32 to vector<256x1xf32>
    %38 = arith.divf %37, %36 : vector<256x1xf32>
    %c5 = arith.constant 5 : index
    %c0_18 = arith.constant 0 : index
    %39 = vector.load %arg3[%c5, %c0_18] : memref<16x128xf32, #tpu.memory_space<vmem>>, vector<1x128xf32>
    %40 = vector.broadcast %0 : vector<256x1xf32> to vector<256x128xf32>
    %41 = vector.broadcast %39 : vector<1x128xf32> to vector<256x128xf32>
    %42 = arith.mulf %40, %41 : vector<256x128xf32>
    %c6 = arith.constant 6 : index
    %c0_19 = arith.constant 0 : index
    %43 = vector.load %arg3[%c6, %c0_19] : memref<16x128xf32, #tpu.memory_space<vmem>>, vector<1x128xf32>
    %44 = vector.broadcast %1 : vector<256x1xf32> to vector<256x128xf32>
    %45 = vector.broadcast %43 : vector<1x128xf32> to vector<256x128xf32>
    %46 = arith.mulf %44, %45 : vector<256x128xf32>
    %47 = arith.addf %42, %46 : vector<256x128xf32>
    %c7 = arith.constant 7 : index
    %c0_20 = arith.constant 0 : index
    %48 = vector.load %arg3[%c7, %c0_20] : memref<16x128xf32, #tpu.memory_space<vmem>>, vector<1x128xf32>
    %49 = vector.broadcast %48 : vector<1x128xf32> to vector<256x128xf32>
    %50 = arith.addf %47, %49 : vector<256x128xf32>
    %cst_21 = arith.constant 0.000000e+00 : f32
    %51 = vector.broadcast %cst_21 : f32 to vector<256x128xf32>
    %52 = arith.maximumf %50, %51 : vector<256x128xf32>
    %c8 = arith.constant 8 : index
    %c0_22 = arith.constant 0 : index
    %53 = vector.load %arg3[%c8, %c0_22] : memref<16x128xf32, #tpu.memory_space<vmem>>, vector<1x128xf32>
    %54 = vector.broadcast %53 : vector<1x128xf32> to vector<256x128xf32>
    %55 = arith.mulf %52, %54 : vector<256x128xf32>
    %cst_23 = arith.constant dense<0.000000e+00> : vector<256xf32>
    %56 = vector.multi_reduction <add>, %55, %cst_23 [1] : vector<256x128xf32> to vector<256xf32>
    %57 = vector.shape_cast %56 : vector<256xf32> to vector<256x1xf32>
    %c1_24 = arith.constant 1 : index
    %58 = memref.load %arg2[%c1_24] : memref<4xf32, #tpu.memory_space<smem>>
    %59 = vector.broadcast %58 : f32 to vector<256x1xf32>
    %60 = arith.addf %57, %59 : vector<256x1xf32>
    %61 = math.tanh %60 : vector<256x1xf32>
    %c9 = arith.constant 9 : index
    %c0_25 = arith.constant 0 : index
    %62 = vector.load %arg3[%c9, %c0_25] : memref<16x128xf32, #tpu.memory_space<vmem>>, vector<1x128xf32>
    %63 = vector.broadcast %62 : vector<1x128xf32> to vector<256x128xf32>
    %64 = arith.mulf %52, %63 : vector<256x128xf32>
    %cst_26 = arith.constant dense<0.000000e+00> : vector<256xf32>
    %65 = vector.multi_reduction <add>, %64, %cst_26 [1] : vector<256x128xf32> to vector<256xf32>
    %66 = vector.shape_cast %65 : vector<256xf32> to vector<256x1xf32>
    %c2_27 = arith.constant 2 : index
    %67 = memref.load %arg2[%c2_27] : memref<4xf32, #tpu.memory_space<smem>>
    %68 = vector.broadcast %67 : f32 to vector<256x1xf32>
    %69 = arith.addf %66, %68 : vector<256x1xf32>
    %70 = math.tanh %69 : vector<256x1xf32>
    %71 = arith.mulf %38, %61 : vector<256x1xf32>
    %cst_28 = arith.constant 1.000000e+00 : f32
    %72 = vector.broadcast %cst_28 : f32 to vector<256x1xf32>
    %73 = arith.subf %72, %38 : vector<256x1xf32>
    %74 = arith.mulf %73, %70 : vector<256x1xf32>
    %75 = arith.addf %71, %74 : vector<256x1xf32>
    %c0_29 = arith.constant 0 : index
    %c0_30 = arith.constant 0 : index
    %76 = vector.load %arg5[%c0_29, %c0_30] : memref<256x1xf32, #tpu.memory_space<vmem>>, vector<256x1xf32>
    tpu.vector_store %arg5[%c0_29, %c0_30], %75 {strides = array<i32>} : memref<256x1xf32, #tpu.memory_space<vmem>>, vector<256x1xf32>,
    return
  }
  func.func @transform_0(%arg0: i32) -> (i32, i32) {
    %c0_i32 = arith.constant 0 : i32
    %c0_i32_0 = arith.constant 0 : i32
    return %arg0, %c0_i32 : i32, i32
  }
  func.func @transform_1(%arg0: i32) -> i32 {
    %c0_i32 = arith.constant 0 : i32
    %c0_i32_0 = arith.constant 0 : i32
    return %c0_i32 : i32
  }
  func.func @transform_2(%arg0: i32) -> (i32, i32) {
    %c0_i32 = arith.constant 0 : i32
    %c0_i32_0 = arith.constant 0 : i32
    %c0_i32_1 = arith.constant 0 : i32
    return %c0_i32, %c0_i32_0 : i32, i32
  }
  func.func @transform_3(%arg0: i32) -> (i32, i32) {
    %c0_i32 = arith.constant 0 : i32
    %c0_i32_0 = arith.constant 0 : i32
    %c0_i32_1 = arith.constant 0 : i32
    return %c0_i32, %c0_i32_0 : i32, i32
  }
  func.func @transform_4(%arg0: i32) -> (i32, i32) {
    %c0_i32 = arith.constant 0 : i32
    %c0_i32_0 = arith.constant 0 : i32
    return %arg0, %c0_i32 : i32, i32
  }
}

</mosaic_0001>

<bundles_post_ra>
// kernel: switch_controller_forward.1
= control target key start
LH: loop header
LB: loop body
LE: loop exit
PB: predicated region body
PF: predicated region fallthrough
CT: control target
= control target key end

     0   :  { %9 = vsyncpa [#allocation3], 0  ;;  %s3730_s0 = inlined_call_operand.vmem [shape: f32[256,2], index: 0, kind: input, shape index: {}]   ;;  %s3731_s1 = inlined_call_operand.vmem [shape: f32[4], index: 1, kind: input, shape index: {}]   ;;  %s3732_s2 = inlined_call_operand.vmem [shape: f32[16,128], index: 2, kind: input, shape index: {}]   ;;  %s3733_s3 = inlined_call_operand.vmem [shape: bf16[128,128], index: 3, kind: input, shape index: {}]   ;;  %s3734_s4 = inlined_call_operand.vmem [shape: f32[256,1], index: 4, kind: output, shape index: {}]  }
   0x1   :  { %s18_s17 = sshll.u32 %s3731_s1, 4  ;;  %s19_s17 = int_to_ptr.vmem [resolvable:$true] %s18_s17 }
   0x2   :  { %s2199_s18 = scalar_lea.vmem %s19_s17, 16  ;;  %p2204_p1 = scmp.lt.s32.totalorder %s19_s17, %s19_s17 }
   0x3   :  { %p2200_p0 = scmp.ne.s32.totalorder %s19_s17, %s2199_s18  ;;  %p2205_p2 = scmp.lt.s32.totalorder %s2199_s18, %s2199_s18 }
   0x5   :  { %p2206_p3 = por %p2205_p2, %p2204_p1 }
   0x7   :  { %p2207_p4 = pnand %p2206_p3, %p2200_p0 }
   0x9   :  { %2210 = shalt.err (!%p2207_p4)
}
   0xa   :  { %s2213_s19 = smov [#allocation2]  }
   0xb   :  { %21 = dma.vmem_to_smem %s19_s17, 16, %s2213_s19, [#allocation3]  }
   0xc   :  { %2211 = dma.done.wait [#allocation3], 16  }
   0xd   :  { %2212 = vsyncadd [#allocation3], 4294967280 }
   0xe   :  { %29 = sfence }
   0xf   :  { %v33_v0 = vld [vmem:[%s3730_s0 + $0x10] sm:$0xff]  ;;  %v31_v1 = vld [vmem:[%s3730_s0] sm:$0xff]  ;;  %v2214_v2 = vmov 0   ;;  %v2255_v3 = vld [vmem:[%s3730_s0 + $0x18] sm:$0xff]  ;;  %v2215_v12 = vmov 1   ;;  %s905_s9 = sld [smem:[#allocation2]] }
  0x10   :  { %1918 = vset.pattern.permute.xlu1 %v2214_v2  ;;  %1917 = vset.pattern.permute.xlu0 %v2214_v2  ;;  %v2260_v4 = vld [vmem:[%s3730_s0 + $0x8] sm:$0xff]  ;;  %v2272_v6 = vld [vmem:[%s3730_s0 + $0x20] sm:$0xff]  ;;  %v2279_v7 = vld [vmem:[%s3730_s0 + $0x38] sm:$0xff]  ;;  %s1825_s10 = sld [smem:[#allocation2 + $0x2]]  ;;  %vm1768_vm0 = vcmask 7168  }
  0x11   :  { %76 = vperm.xlu1 %1918, %v33_v0   ;;  %66 = vperm.xlu0 %1917, %v31_v1   ;;  %v2267_v5 = vld [vmem:[%s3730_s0 + $0x28] sm:$0xff]  ;;  %v2284_v8 = vld [vmem:[%s3730_s0 + $0x30] sm:$0xff]  ;;  %v47_v9 = vld [vmem:[%s3730_s0 + $0x80] sm:$0xff] }
  0x12   :  { %v2292_v10 = vld [vmem:[%s3730_s0 + $0x40] sm:$0xff]  ;;  %v48_v11 = vld [vmem:[%s3730_s0 + $0x88] sm:$0xff]  ;;  %v49_v13 = vld [vmem:[%s3730_s0 + $0x90] sm:$0xff] }
  0x13   :  { %v1935_v14 = vld [vmem:[%s3733_s3] sm:$0xff]   ;;  %v1936_v16 = vld [vmem:[%s3733_s3 + $0x8] sm:$0xff]   ;;  %v2319_v17 = vld [vmem:[%s3730_s0 + $0xb0] sm:$0xff] }
  0x14   :  { %v2310_v15 = vld [vmem:[%s3730_s0 + $0xa0] sm:$0xff]  ;;  %1898 = vmatprep.subr.bf16.mxu1 %v1935_v14  ;;  %1850 = vmatprep.subr.bf16.mxu0 %v1935_v14  ;;  %v50_v18 = vld [vmem:[%s3730_s0 + $0x98] sm:$0xff]  ;;  %v1937_v19 = vld [vmem:[%s3733_s3 + $0x10] sm:$0xff]  }
  0x15   :  { %81 = vperm.xlu1 %1918, %v2255_v3   ;;  %71 = vperm.xlu0 %1917, %v2260_v4   ;;  %v2332_v20 = vld [vmem:[%s3730_s0 + $0x48] sm:$0xff]  ;;  %v1938_v21 = vld [vmem:[%s3733_s3 + $0x18] sm:$0xff]   ;;  %v1939_v23 = vld [vmem:[%s3733_s3 + $0x20] sm:$0xff]  }
  0x16   :  { %1906 = vmatpush3.bf16.msra.mxu1 %v1935_v14  ;;  %1851 = vmatpush3.bf16.msra.mxu0 %v1935_v14  ;;  %v2341_v22 = vld [vmem:[%s3730_s0 + $0x58] sm:$0xff]  ;;  %v2351_v24 = vld [vmem:[%s3730_s0 + $0x68] sm:$0xff]  ;;  %v1941_v27 = vld [vmem:[%s3733_s3 + $0x30] sm:$0xff]  }
  0x17   :  { %1899 = vmatprep.subr.bf16.mxu1 %v1936_v16  ;;  %1852 = vmatprep.subr.bf16.mxu0 %v1936_v16  ;;  %v1940_v25 = vld [vmem:[%s3733_s3 + $0x28] sm:$0xff]   ;;  %v2360_v26 = vld [vmem:[%s3730_s0 + $0x78] sm:$0xff]  ;;  %v41_v32 = vld [vmem:[%s3730_s0 + $0x50] sm:$0xff] }
  0x18   :  { %v52_v28 = vld [vmem:[%s3730_s0 + $0xa8] sm:$0xff]  ;;  %v1942_v29 = vld [vmem:[%s3733_s3 + $0x38] sm:$0xff]   ;;  %v43_v34 = vld [vmem:[%s3730_s0 + $0x60] sm:$0xff] }
  0x19   :  { %91 = vperm.xlu1 %1918, %v2267_v5   ;;  %86 = vperm.xlu0 %1917, %v2272_v6   ;;  %v54_v30 = vld [vmem:[%s3730_s0 + $0xb8] sm:$0xff]  ;;  %v56_v31 = vld [vmem:[%s3730_s0 + $0xc8] sm:$0xff]  ;;  %v55_v35 = vld [vmem:[%s3730_s0 + $0xc0] sm:$0xff] }
  0x1a   :  { %1907 = vmatpush3.bf16.msra.mxu1 %v1936_v16  ;;  %1853 = vmatpush3.bf16.msra.mxu0 %v1936_v16  ;;  %v58_v33 = vld [vmem:[%s3730_s0 + $0xd8] sm:$0xff]  ;;  %v60_v36 = vld [vmem:[%s3730_s0 + $0xe8] sm:$0xff]  ;;  %v45_v37 = vld [vmem:[%s3730_s0 + $0x70] sm:$0xff] }
  0x1b   :  { %1900 = vmatprep.subr.bf16.mxu1 %v1937_v19  ;;  %1854 = vmatprep.subr.bf16.mxu0 %v1937_v19  ;;  %v62_v38 = vld [vmem:[%s3730_s0 + $0xf8] sm:$0xff]  ;;  %v57_v39 = vld [vmem:[%s3730_s0 + $0xd0] sm:$0xff]  ;;  %v59_v42 = vld [vmem:[%s3730_s0 + $0xe0] sm:$0xff] }
  0x1c   :  { %v2451_v51 = vld [vmem:[%s3732_s2 + $0x5] ss:$0 sm:$0xff]  ;;  %v2456_v52 = vld [vmem:[%s3732_s2 + $0x6] ss:$0 sm:$0xff]  ;;  %v2467_v57 = vld [vmem:[%s3732_s2 + $0x7] ss:$0 sm:$0xff] }
  0x1d   :  { %101 = vperm.xlu1 %1918, %v2279_v7   ;;  %96 = vperm.xlu0 %1917, %v2284_v8   ;;  %v61_v60 = vld [vmem:[%s3730_s0 + $0xf0] sm:$0xff]  ;;  %v2477_v61 = vld [vmem:[%s3732_s2] ss:$0 sm:$0xff]  ;;  %v2482_v62 = vld [vmem:[%s3732_s2 + $0x1] ss:$0 sm:$0xff] }
  0x1e   :  { %1908 = vmatpush3.bf16.msra.mxu1 %v1937_v19  ;;  %1855 = vmatpush3.bf16.msra.mxu0 %v1937_v19 }
  0x1f   :  { %1901 = vmatprep.subr.bf16.mxu1 %v1938_v21  ;;  %1856 = vmatprep.subr.bf16.mxu0 %v1938_v21 }
  0x21   :  { %146 = vperm.xlu1 %1918, %v47_v9   ;;  %106 = vperm.xlu0 %1917, %v2292_v10  }
  0x22   :  { %1909 = vmatpush3.bf16.msra.mxu1 %v1938_v21  ;;  %1857 = vmatpush3.bf16.msra.mxu0 %v1938_v21 }
  0x23   :  { %1902 = vmatprep.subr.bf16.mxu1 %v1939_v23  ;;  %1858 = vmatprep.subr.bf16.mxu0 %v1939_v23 }
  0x25   :  { %1919 = vset.pattern.permute.xlu1 %v2215_v12  ;;  %151 = vperm.xlu0 %1917, %v48_v11  }
  0x26   :  { %262 = vperm.xlu1 %1919, %v31_v1   ;;  %1910 = vmatpush3.bf16.msra.mxu1 %v1939_v23 }
  0x27   :  { %1859 = vmatpush3.bf16.msra.mxu0 %v1939_v23  ;;  %1903 = vmatprep.subr.bf16.mxu1 %v1940_v25 }
  0x28   :  { %1860 = vmatprep.subr.bf16.mxu0 %v1940_v25 }
  0x29   :  { %156 = vperm.xlu0 %1917, %v49_v13  }
  0x2a   :  { %326 = vperm.xlu1 %1919, %v47_v9   ;;  %1911 = vmatpush3.bf16.msra.mxu1 %v1940_v25 }
  0x2b   :  { %1861 = vmatpush3.bf16.msra.mxu0 %v1940_v25  ;;  %1904 = vmatprep.subr.bf16.mxu1 %v1941_v27 }
  0x2c   :  { %1862 = vmatprep.subr.bf16.mxu0 %v1941_v27 }
  0x2d   :  { %166 = vperm.xlu0 %1917, %v2310_v15  }
  0x2e   :  { %330 = vperm.xlu1 %1919, %v48_v11   ;;  %1912 = vmatpush3.bf16.msra.mxu1 %v1941_v27  ;;  %v2513_v11 = vld [vmem:[%s3732_s2 + $0x2] ss:$0 sm:$0xff] }
  0x2f   :  { %1905 = vmatprep.subr.bf16.mxu1 %v1942_v29  ;;  %1863 = vmatpush3.bf16.msra.mxu0 %v1941_v27 }
  0x30   :  { %1864 = vmatprep.subr.bf16.mxu0 %v1942_v29 }
  0x31   :  { %176 = vperm.xlu0 %1917, %v2319_v17  }
  0x32   :  { %1920 = vset.pattern.permute.xlu1 %v2214_v2  ;;  %1913 = vmatpush3.bf16.msra.mxu1 %v1942_v29 }
  0x33   :  { %161 = vperm.xlu1 %1920, %v50_v18   ;;  %1865 = vmatpush3.bf16.msra.mxu0 %v1942_v29 }
  0x35   :  { %111 = vperm.xlu0 %1917, %v2332_v20  }
  0x37   :  { %1921 = vset.pattern.permute.xlu1 %v2215_v12 }
  0x38   :  { %270 = vperm.xlu1 %1921, %v33_v0  }
  0x39   :  { %121 = vperm.xlu0 %1917, %v2341_v22  }
  0x3c   :  { %334 = vperm.xlu1 %1921, %v49_v13  }
  0x3d   :  { %131 = vperm.xlu0 %1917, %v2351_v24  }
  0x40   :  { %338 = vperm.xlu1 %1921, %v50_v18  }
  0x41   :  { %141 = vperm.xlu0 %1917, %v2360_v26  }
  0x44   :  { %1922 = vset.pattern.permute.xlu1 %v2214_v2 }
  0x45   :  { %171 = vperm.xlu1 %1922, %v52_v28   ;;  %1933 = vset.pattern.permute.xlu0 %v2215_v12 }
  0x46   :  { %266 = vperm.xlu0 %1933, %v2260_v4  }
  0x49   :  { %1923 = vset.pattern.permute.xlu1 %v2215_v12 }
  0x4a   :  { %278 = vperm.xlu1 %1923, %v2272_v6   ;;  %274 = vperm.xlu0 %1933, %v2255_v3   ;;  %v2496_v3 = vld [vmem:[%s3732_s2 + $0x8] ss:$0 sm:$0xff] }
  0x4e   :  { %342 = vperm.xlu1 %1923, %v2310_v15   ;;  %282 = vperm.xlu0 %1933, %v2267_v5  }
  0x52   :  { %346 = vperm.xlu1 %1923, %v52_v28   ;;  %290 = vperm.xlu0 %1933, %v2279_v7  }
  0x56   :  { %1924 = vset.pattern.permute.xlu1 %v2214_v2  ;;  %294 = vperm.xlu0 %1933, %v2292_v10  }
  0x57   :  { %181 = vperm.xlu1 %1924, %v54_v30  }
  0x5a   :  { %362 = vperm.xlu0 %1933, %v56_v31  }
  0x5b   :  { %1925 = vset.pattern.permute.xlu1 %v2215_v12 }
  0x5c   :  { %286 = vperm.xlu1 %1925, %v2284_v8  }
  0x5e   :  { %302 = vperm.xlu0 %1933, %v41_v32  }
  0x60   :  { %350 = vperm.xlu1 %1925, %v2319_v17  }
  0x62   :  { %370 = vperm.xlu0 %1933, %v58_v33  }
  0x64   :  { %354 = vperm.xlu1 %1925, %v54_v30  }
  0x66   :  { %310 = vperm.xlu0 %1933, %v43_v34  }
  0x68   :  { %1926 = vset.pattern.permute.xlu1 %v2214_v2 }
  0x69   :  { %186 = vperm.xlu1 %1926, %v55_v35  }
  0x6a   :  { %378 = vperm.xlu0 %1933, %v60_v36  }
  0x6d   :  { %191 = vperm.xlu1 %1926, %v56_v31  }
  0x6e   :  { %318 = vperm.xlu0 %1933, %v45_v37  }
  0x71   :  { %1927 = vset.pattern.permute.xlu1 %v2215_v12 }
  0x72   :  { %298 = vperm.xlu1 %1927, %v2332_v20   ;;  %386 = vperm.xlu0 %1933, %v62_v38  }
  0x76   :  { %358 = vperm.xlu1 %1927, %v55_v35  }
  0x7a   :  { %1928 = vset.pattern.permute.xlu1 %v2214_v2 }
  0x7b   :  { %116 = vperm.xlu1 %1928, %v41_v32  }
  0x7f   :  { %196 = vperm.xlu1 %1928, %v57_v39  }
  0x83   :  { %201 = vperm.xlu1 %1928, %v58_v33  }
  0x87   :  { %1929 = vset.pattern.permute.xlu1 %v2215_v12 }
  0x88   :  { %306 = vperm.xlu1 %1929, %v2341_v22  }
  0x8c   :  { %366 = vperm.xlu1 %1929, %v57_v39  }
  0x90   :  { %v2422_v40 = vpop.permute.xlu1 %76  ;;  %1930 = vset.pattern.permute.xlu1 %v2214_v2  ;;  %v2425_v41 = vpop.permute.xlu0 %66 }
  0x91   :  { %126 = vperm.xlu1 %1930, %v43_v34   ;;  %v1136_v53 = vmul.f32 %v2451_v51, %v2425_v41  ;;  %v1138_v23 = vmul.f32 %v2451_v51, %v2422_v40 }
  0x94   :  { %v2430_v43 = vpop.permute.xlu1 %81  ;;  %v2432_v44 = vpop.permute.xlu0 %71 }
  0x95   :  { %206 = vperm.xlu1 %1930, %v59_v42  }
  0x98   :  { %v2434_v45 = vpop.permute.xlu1 %91  ;;  %v2436_v46 = vpop.permute.xlu0 %86 }
  0x99   :  { %211 = vperm.xlu1 %1930, %v60_v36  }
  0x9c   :  { %v2438_v47 = vpop.permute.xlu1 %101  ;;  %v2440_v48 = vpop.permute.xlu0 %96 }
  0x9d   :  { %1931 = vset.pattern.permute.xlu1 %v2215_v12 }
  0x9e   :  { %314 = vperm.xlu1 %1931, %v2351_v24  }
  0xa0   :  { %v2444_v49 = vpop.permute.xlu1 %146  ;;  %v2446_v50 = vpop.permute.xlu0 %106 }
  0xa1   :  { %v244_v0 = vmul.f32 %v2477_v61, %v2444_v49 }
  0xa2   :  { %374 = vperm.xlu1 %1931, %v59_v42  }
  0xa4   :  { %v2460_v54 = vpop.permute.xlu0 %151 }
  0xa5   :  { %v263_v55 = vpop.permute.xlu1 %262  ;;  %v245_v4 = vmul.f32 %v2477_v61, %v2460_v54 }
  0xa6   :  { %v1173_v56 = vmul.f32 %v2456_v52, %v263_v55  ;;  %1932 = vset.pattern.permute.xlu1 %v2214_v2  ;;  %v393_v39 = vmul.f32 %v2482_v62, %v263_v55 }
  0xa7   :  { %136 = vperm.xlu1 %1932, %v45_v37  }
  0xa8   :  { %v1205_v58 = vadd.f32 %v1173_v56, %v1136_v53  ;;  %v2469_v59 = vpop.permute.xlu0 %156  ;;  %v229_v56 = vmul.f32 %v2477_v61, %v2432_v44 }
  0xa9   :  { %v2484_v63 = vpop.permute.xlu1 %326 }
  0xaa   :  { %v409_v1 = vmul.f32 %v2482_v62, %v2484_v63  ;;  %v2491_v2 = vadd.f32 %v2467_v57, %v1205_v58 }
  0xab   :  { %216 = vperm.xlu1 %1932, %v61_v60  }
  0xac   :  { %v2500_v5 = vpop.permute.xlu0 %166  ;;  %v3747_v6 = vmax.f32 %v2491_v2, 0.0  ;;  %v441_v7 = vadd.f32 %v409_v1, %v244_v0 }
  0xad   :  { %v2503_v8 = vpop.permute.xlu1 %330 }
  0xae   :  { %v410_v9 = vmul.f32 %v2482_v62, %v2503_v8  ;;  %v1311_v10 = vmul.f32 %v2496_v3, %v3747_v6  ;;  %v478_v15 = vadd.f32 %v2513_v11, %v441_v7 }
  0xaf   :  { %221 = vperm.xlu1 %1932, %v62_v38   ;;  %v228_v38 = vmul.f32 %v2477_v61, %v2425_v41  ;;  %v230_v41 = vmul.f32 %v2477_v61, %v2422_v40 }
  0xb0   :  { %1343 = vadd.xlane.f32.xlu0 %v1311_v10  ;;  %v2515_v13 = vpop.permute.xlu0 %176  ;;  %v442_v14 = vadd.f32 %v410_v9, %v245_v4  ;;  %v510_v19 = vmax.f32 %v478_v15, 0.0  ;;  %v1140_v10 = vmul.f32 %v2451_v51, %v2436_v46 }
  0xb1   :  { %v425_v4 = vadd.f32 %v393_v39, %v228_v38 }
  0xb2   :  { %v2518_v16 = vpop.permute.xlu1 %161  ;;  %v479_v17 = vadd.f32 %v2513_v11, %v442_v14 }
  0xb3   :  { %1934 = vset.pattern.permute.xlu1 %v2215_v12  ;;  %v246_v12 = vmul.f32 %v2477_v61, %v2469_v59  ;;  %v247_v34 = vmul.f32 %v2477_v61, %v2518_v16 }
  0xb4   :  { %322 = vperm.xlu1 %1934, %v2360_v26   ;;  %v2523_v18 = vpop.permute.xlu0 %111  ;;  %v511_v20 = vmax.f32 %v479_v17, 0.0 }
  0xb6   :  { %v534_v21 = vpack.c.bf16 %v511_v20, %v510_v19  ;;  %v231_v19 = vmul.f32 %v2477_v61, %v2430_v43  ;;  %v1137_v20 = vmul.f32 %v2451_v51, %v2432_v44  ;;  %v233_v44 = vmul.f32 %v2477_v61, %v2434_v45 }
  0xb7   :  { %v271_v22 = vpop.permute.xlu1 %270 }
  0xb8   :  { %v1175_v24 = vmul.f32 %v2456_v52, %v271_v22  ;;  %382 = vperm.xlu1 %1934, %v61_v60   ;;  %1882 = vmatprep.mubr.bf16.mxu1 %v534_v21  ;;  %v2528_v25 = vpop.permute.xlu0 %121  ;;  %v395_v58 = vmul.f32 %v2482_v62, %v271_v22  ;;  %v232_v21 = vmul.f32 %v2477_v61, %v2436_v46 }
  0xba   :  { %v1207_v27 = vadd.f32 %v1175_v24, %v1138_v23  ;;  %v427_v14 = vadd.f32 %v395_v58, %v230_v41  ;;  %v462_v23 = vadd.f32 %v2513_v11, %v425_v4 }
  0xbb   :  { %v2532_v26 = vpop.permute.xlu1 %334 }
  0xbc   :  { %v411_v28 = vmul.f32 %v2482_v62, %v2532_v26  ;;  %v2536_v29 = vpop.permute.xlu0 %131  ;;  %v2539_v30 = vadd.f32 %v2467_v57, %v1207_v27 }
  0xbe   :  { %v443_v31 = vadd.f32 %v411_v28, %v246_v12  ;;  %v3744_v32 = vmax.f32 %v2539_v30, 0.0 }
  0xbf   :  { %v2542_v33 = vpop.permute.xlu1 %338 }
  0xc0   :  { %v412_v35 = vmul.f32 %v2482_v62, %v2542_v33  ;;  %v2548_v36 = vpop.permute.xlu0 %141  ;;  %v1313_v37 = vmul.f32 %v2496_v3, %v3744_v32  ;;  %v480_v53 = vadd.f32 %v2513_v11, %v443_v31 }
  0xc2   :  { %v444_v42 = vadd.f32 %v412_v35, %v247_v34  ;;  %1347 = vadd.xlane.f32.xlu0 %v1313_v37  ;;  %v512_v7 = vmax.f32 %v480_v53, 0.0  ;;  %v464_v35 = vadd.f32 %v2513_v11, %v427_v14  ;;  %v248_v37 = vmul.f32 %v2477_v61, %v2500_v5 }
  0xc3   :  { %v494_v53 = vmax.f32 %v462_v23, 0.0 }
  0xc4   :  { %v2560_v60 = vpop.permute.xlu1 %171  ;;  %v481_v0 = vadd.f32 %v2513_v11, %v444_v42 }
  0xc5   :  { %v267_v1 = vpop.permute.xlu0 %266  ;;  %v249_v23 = vmul.f32 %v2477_v61, %v2560_v60 }
  0xc6   :  { %v394_v55 = vmul.f32 %v2482_v62, %v267_v1  ;;  %v513_v9 = vmax.f32 %v481_v0, 0.0  ;;  %v1174_v24 = vmul.f32 %v2456_v52, %v267_v1 }
  0xc8   :  { %v535_v15 = vpack.c.bf16 %v513_v9, %v512_v7  ;;  %v426_v17 = vadd.f32 %v394_v55, %v229_v56  ;;  %v1206_v58 = vadd.f32 %v1174_v24, %v1137_v20  ;;  %v1139_v9 = vmul.f32 %v2451_v51, %v2430_v43 }
  0xc9   :  { %v279_v40 = vpop.permute.xlu1 %278  ;;  %v275_v22 = vpop.permute.xlu0 %274 }
  0xca   :  { %v397_v12 = vmul.f32 %v2482_v62, %v279_v40  ;;  %v1177_v27 = vmul.f32 %v2456_v52, %v279_v40  ;;  %v396_v28 = vmul.f32 %v2482_v62, %v275_v22  ;;  %1883 = vmatmul.mubr.bf16.vlgmr.msra.gmra.mrb[0].mxu1 %v535_v15  ;;  %v463_v31 = vadd.f32 %v2513_v11, %v426_v17 }
  0xcb   :  { %v1176_v0 = vmul.f32 %v2456_v52, %v275_v22  ;;  %v496_v15 = vmax.f32 %v464_v35, 0.0 }
  0xcc   :  { %v1209_v34 = vadd.f32 %v1177_v27, %v1140_v10  ;;  %v428_v46 = vadd.f32 %v396_v28, %v231_v19  ;;  %v429_v38 = vadd.f32 %v397_v12, %v232_v21  ;;  %v495_v56 = vmax.f32 %v463_v31, 0.0 }
  0xcd   :  { %v2585_v39 = vpop.permute.xlu1 %342  ;;  %v283_v42 = vpop.permute.xlu0 %282  ;;  %v1208_v24 = vadd.f32 %v1176_v0, %v1139_v9  ;;  %v2607_v12 = vadd.f32 %v2467_v57, %v1206_v58  ;;  %v1141_v27 = vmul.f32 %v2451_v51, %v2434_v45 }
  0xce   :  { %v413_v1 = vmul.f32 %v2482_v62, %v2585_v39  ;;  %v398_v4 = vmul.f32 %v2482_v62, %v283_v42  ;;  %v526_v41 = vpack.c.bf16 %v495_v56, %v494_v53  ;;  %v2592_v55 = vadd.f32 %v2467_v57, %v1209_v34 }
  0xcf   :  { %v465_v7 = vadd.f32 %v2513_v11, %v428_v46  ;;  %v1178_v17 = vmul.f32 %v2456_v52, %v283_v42  ;;  %v466_v22 = vadd.f32 %v2513_v11, %v429_v38  ;;  %v3741_v0 = vmax.f32 %v2607_v12, 0.0 }
  0xd0   :  { %v445_v10 = vadd.f32 %v413_v1, %v248_v37  ;;  %v430_v14 = vadd.f32 %v398_v4, %v233_v44  ;;  %1866 = vmatprep.mubr.bf16.mxu0 %v526_v41  ;;  %v3743_v21 = vmax.f32 %v2592_v55, 0.0  ;;  %v2625_v1 = vadd.f32 %v2467_v57, %v1208_v24 }
  0xd1   :  { %v2598_v19 = vpop.permute.xlu1 %346  ;;  %v291_v20 = vpop.permute.xlu0 %290  ;;  %v497_v40 = vmax.f32 %v465_v7, 0.0  ;;  %v1210_v35 = vadd.f32 %v1178_v17, %v1141_v27  ;;  %v498_v42 = vmax.f32 %v466_v22, 0.0  ;;  %v235_v4 = vmul.f32 %v2477_v61, %v2438_v47 }
  0xd2   :  { %v414_v43 = vmul.f32 %v2482_v62, %v2598_v19  ;;  %v1315_v28 = vmul.f32 %v2496_v3, %v3743_v21  ;;  %v467_v44 = vadd.f32 %v2513_v11, %v430_v14  ;;  %v482_v46 = vadd.f32 %v2513_v11, %v445_v10 }
  0xd3   :  { %v527_v31 = vpack.c.bf16 %v497_v40, %v496_v15  ;;  %v400_v37 = vmul.f32 %v2482_v62, %v291_v20  ;;  %v1180_v45 = vmul.f32 %v2456_v52, %v291_v20  ;;  %v1143_v7 = vmul.f32 %v2451_v51, %v2438_v47 }
  0xd4   :  { %v446_v34 = vadd.f32 %v414_v43, %v249_v23  ;;  %1351 = vadd.xlane.f32.xlu0 %v1315_v28  ;;  %v499_v53 = vmax.f32 %v467_v44, 0.0  ;;  %v514_v10 = vmax.f32 %v482_v46, 0.0  ;;  %v1144_v15 = vmul.f32 %v2451_v51, %v2446_v50 }
  0xd5   :  { %1867 = vmatmul.mubr.bf16.vlgmr.msra.gmra.mrb[0].mxu0 %v527_v31  ;;  %v2617_v38 = vpop.permute.xlu0 %294  ;;  %v432_v17 = vadd.f32 %v400_v37, %v235_v4  ;;  %v2636_v20 = vadd.f32 %v2467_v57, %v1210_v35  ;;  %v1212_v40 = vadd.f32 %v1180_v45, %v1143_v7  ;;  %v1312_v23 = vmul.f32 %v2496_v3, %v3741_v0 }
  0xd6   :  { %v2620_v56 = vpop.permute.xlu1 %181  ;;  %v483_v58 = vadd.f32 %v2513_v11, %v446_v34  ;;  %v528_v41 = vpack.c.bf16 %v499_v53, %v498_v42  ;;  %v1181_v9 = vmul.f32 %v2456_v52, %v2617_v38  ;;  %v3737_v47 = vmax.f32 %v2625_v1, 0.0 }
  0xd7   :  { %v234_v24 = vmul.f32 %v2477_v61, %v2440_v48  ;;  %v1142_v43 = vmul.f32 %v2451_v51, %v2440_v48  ;;  %v3736_v34 = vmax.f32 %v2636_v20, 0.0  ;;  %v469_v46 = vadd.f32 %v2513_v11, %v432_v17 }
  0xd8   :  { %v515_v14 = vmax.f32 %v483_v58, 0.0  ;;  %1870 = vmatprep.mubr.bf16.mxu0 %v528_v41  ;;  %v1213_v28 = vadd.f32 %v1181_v9, %v1144_v15  ;;  %v1314_v42 = vmul.f32 %v2496_v3, %v3737_v47  ;;  %v2654_v48 = vadd.f32 %v2467_v57, %v1212_v40 }
  0xd9   :  { %v250_v53 = vmul.f32 %v2477_v61, %v2515_v13  ;;  %v1316_v9 = vmul.f32 %v2496_v3, %v3736_v34 }
  0xda   :  { %v536_v22 = vpack.c.bf16 %v515_v14, %v514_v10  ;;  %3765 = vst [vmem:[#allocation5_spill] sm:$0xff] %v2654_v48  ;;  %v2667_v7 = vadd.f32 %v2467_v57, %v1213_v28  ;;  %v501_v10 = vmax.f32 %v469_v46, 0.0  ;;  %v3735_v40 = vmax.f32 %v2654_v48, 0.0 }
  0xdb   :  { %v287_v27 = vpop.permute.xlu1 %286 }
  0xdc   :  { %v399_v31 = vmul.f32 %v2482_v62, %v287_v27  ;;  %v1179_v44 = vmul.f32 %v2456_v52, %v287_v27  ;;  %1886 = vmatprep.mubr.bf16.mxu1 %v536_v22  ;;  %1345 = vadd.xlane.f32.xlu1 %v1312_v23  ;;  %v251_v22 = vmul.f32 %v2477_v61, %v2620_v56  ;;  %v3738_v28 = vmax.f32 %v2667_v7, 0.0 }
  0xde   :  { %v431_v35 = vadd.f32 %v399_v31, %v234_v24  ;;  %v1211_v37 = vadd.f32 %v1179_v44, %v1142_v43  ;;  %v1318_v44 = vmul.f32 %v2496_v3, %v3735_v40 }
  0xdf   :  { %v2658_v45 = vpop.permute.xlu1 %350 }
  0xe0   :  { %v415_v58 = vmul.f32 %v2482_v62, %v2658_v45  ;;  %1349 = vadd.xlane.f32.xlu1 %v1314_v42  ;;  %v2663_v4 = vadd.f32 %v2467_v57, %v1211_v37  ;;  %v468_v41 = vadd.f32 %v2513_v11, %v431_v35  ;;  %v1319_v37 = vmul.f32 %v2496_v3, %v3738_v28 }
  0xe2   :  { %v447_v14 = vadd.f32 %v415_v58, %v250_v53  ;;  %v3742_v15 = vmax.f32 %v2663_v4, 0.0  ;;  %v500_v17 = vmax.f32 %v468_v41, 0.0  ;;  %v401_v41 = vmul.f32 %v2482_v62, %v2617_v38 }
  0xe3   :  { %v2676_v23 = vpop.permute.xlu1 %354  ;;  %v237_v38 = vmul.f32 %v2477_v61, %v2523_v18 }
  0xe4   :  { %v416_v24 = vmul.f32 %v2482_v62, %v2676_v23  ;;  %1353 = vadd.xlane.f32.xlu1 %v1316_v9  ;;  %v1317_v43 = vmul.f32 %v2496_v3, %v3742_v15  ;;  %v529_v27 = vpack.c.bf16 %v501_v10, %v500_v17  ;;  %v484_v46 = vadd.f32 %v2513_v11, %v447_v14 }
  0xe5   :  { %v236_v14 = vmul.f32 %v2477_v61, %v2446_v50 }
  0xe6   :  { %v448_v31 = vadd.f32 %v416_v24, %v251_v22  ;;  %1355 = vadd.xlane.f32.xlu0 %v1317_v43  ;;  %1871 = vmatmul.mubr.bf16.gmra.mrb[4].mxu0 %v529_v27  ;;  %v516_v53 = vmax.f32 %v484_v46, 0.0  ;;  %v2700_v22 = vpop.permute.xlu0 %362 }
  0xe7   :  { %v433_v17 = vadd.f32 %v401_v41, %v236_v14  ;;  %v418_v24 = vmul.f32 %v2482_v62, %v2700_v22 }
  0xe8   :  { %v2688_v35 = vpop.permute.xlu1 %186  ;;  %1357 = vadd.xlane.f32.xlu1 %v1318_v44  ;;  %v485_v42 = vadd.f32 %v2513_v11, %v448_v31  ;;  %v1145_v31 = vmul.f32 %v2451_v51, %v2523_v18 }
  0xe9   :  { %v470_v46 = vadd.f32 %v2513_v11, %v433_v17  ;;  %v252_v41 = vmul.f32 %v2477_v61, %v2688_v35 }
  0xea   :  { %1359 = vadd.xlane.f32.xlu0 %v1319_v37  ;;  %v517_v58 = vmax.f32 %v485_v42, 0.0 }
  0xeb   :  { %v502_v40 = vmax.f32 %v470_v46, 0.0 }
  0xec   :  { %v2696_v9 = vpop.permute.xlu1 %191  ;;  %v537_v10 = vpack.c.bf16 %v517_v58, %v516_v53 }
  0xed   :  { %v253_v43 = vmul.f32 %v2477_v61, %v2696_v9 }
  0xee   :  { %1887 = vmatmul.mubr.bf16.gmra.mrb[4].mxu1 %v537_v10 }
  0xef   :  { %v450_v37 = vadd.f32 %v418_v24, %v253_v43 }
  0xf1   :  { %v299_v27 = vpop.permute.xlu1 %298  ;;  %v487_v43 = vadd.f32 %v2513_v11, %v450_v37 }
  0xf2   :  { %v402_v44 = vmul.f32 %v2482_v62, %v299_v27  ;;  %v1182_v50 = vmul.f32 %v2456_v52, %v299_v27  ;;  %v303_v27 = vpop.permute.xlu0 %302 }
  0xf3   :  { %v403_v28 = vmul.f32 %v2482_v62, %v303_v27 }
  0xf4   :  { %v434_v42 = vadd.f32 %v402_v44, %v237_v38  ;;  %v1214_v53 = vadd.f32 %v1182_v50, %v1145_v31  ;;  %v1183_v38 = vmul.f32 %v2456_v52, %v303_v27 }
  0xf5   :  { %v2713_v58 = vpop.permute.xlu1 %358 }
  0xf6   :  { %v417_v10 = vmul.f32 %v2482_v62, %v2713_v58  ;;  %v2720_v14 = vadd.f32 %v2467_v57, %v1214_v53  ;;  %v471_v18 = vadd.f32 %v2513_v11, %v434_v42 }
  0xf8   :  { %3766 = vst [vmem:[#allocation6_spill] sm:$0xff] %v2720_v14  ;;  %v449_v34 = vadd.f32 %v417_v10, %v252_v41  ;;  %v3739_v17 = vmax.f32 %v2720_v14, 0.0  ;;  %v503_v24 = vmax.f32 %v471_v18, 0.0  ;;  %v519_v41 = vmax.f32 %v487_v43, 0.0 }
  0xfa   :  { %v117_v31 = vpop.permute.xlu1 %116  ;;  %v1320_v44 = vmul.f32 %v2496_v3, %v3739_v17  ;;  %v530_v50 = vpack.c.bf16 %v503_v24, %v502_v40  ;;  %v486_v53 = vadd.f32 %v2513_v11, %v449_v34 }
  0xfb   :  { %v1146_v42 = vmul.f32 %v2451_v51, %v117_v31  ;;  %v238_v40 = vmul.f32 %v2477_v61, %v117_v31  ;;  %v1147_v31 = vmul.f32 %v2451_v51, %v2528_v25 }
  0xfc   :  { %1361 = vadd.xlane.f32.xlu1 %v1320_v44  ;;  %1874 = vmatprep.mubr.bf16.mxu0 %v530_v50  ;;  %v518_v46 = vmax.f32 %v486_v53, 0.0  ;;  %v239_v50 = vmul.f32 %v2477_v61, %v2528_v25  ;;  %v2748_v53 = vpop.permute.xlu0 %370 }
  0xfd   :  { %v1215_v10 = vadd.f32 %v1183_v38, %v1146_v42  ;;  %v435_v38 = vadd.f32 %v403_v28, %v238_v40  ;;  %v420_v42 = vmul.f32 %v2482_v62, %v2748_v53 }
  0xfe   :  { %v2731_v18 = vpop.permute.xlu1 %196  ;;  %v538_v37 = vpack.c.bf16 %v519_v41, %v518_v46 }
  0xff   :  { %v2734_v47 = vadd.f32 %v2467_v57, %v1215_v10  ;;  %v472_v41 = vadd.f32 %v2513_v11, %v435_v38  ;;  %v254_v17 = vmul.f32 %v2477_v61, %v2731_v18 }
 0x100   :  { %1890 = vmatprep.mubr.bf16.mxu1 %v538_v37 }
 0x101   :  { %v3740_v34 = vmax.f32 %v2734_v47, 0.0  ;;  %v504_v15 = vmax.f32 %v472_v41, 0.0 }
 0x102   :  { %v2739_v24 = vpop.permute.xlu1 %201 }
 0x103   :  { %v1321_v43 = vmul.f32 %v2496_v3, %v3740_v34  ;;  %v255_v44 = vmul.f32 %v2477_v61, %v2739_v24 }
 0x105   :  { %1363 = vadd.xlane.f32.xlu0 %v1321_v43  ;;  %v452_v10 = vadd.f32 %v420_v42, %v255_v44 }
 0x107   :  { %v307_v27 = vpop.permute.xlu1 %306 }
 0x108   :  { %v404_v46 = vmul.f32 %v2482_v62, %v307_v27  ;;  %v1184_v28 = vmul.f32 %v2456_v52, %v307_v27 }
 0x10a   :  { %v436_v37 = vadd.f32 %v404_v46, %v239_v50  ;;  %v1216_v40 = vadd.f32 %v1184_v28, %v1147_v31  ;;  %v489_v50 = vadd.f32 %v2513_v11, %v452_v10  ;;  %v311_v31 = vpop.permute.xlu0 %310 }
 0x10b   :  { %v2757_v43 = vpop.permute.xlu1 %366 }
 0x10c   :  { %v419_v25 = vmul.f32 %v2482_v62, %v2757_v43  ;;  %v2764_v34 = vadd.f32 %v2467_v57, %v1216_v40  ;;  %v473_v0 = vadd.f32 %v2513_v11, %v436_v37  ;;  %v1185_v40 = vmul.f32 %v2456_v52, %v311_v31 }
 0x10d   :  { %v521_v41 = vmax.f32 %v489_v50, 0.0 }
 0x10e   :  { %3767 = vst [vmem:[#allocation7_spill] sm:$0xff] %v2764_v34  ;;  %v451_v27 = vadd.f32 %v419_v25, %v254_v17  ;;  %v3745_v38 = vmax.f32 %v2764_v34, 0.0  ;;  %v505_v44 = vmax.f32 %v473_v0, 0.0 }
 0x110   :  { %v127_v42 = vpop.permute.xlu1 %126  ;;  %v1322_v46 = vmul.f32 %v2496_v3, %v3745_v38  ;;  %v531_v28 = vpack.c.bf16 %v505_v44, %v504_v15  ;;  %v488_v21 = vadd.f32 %v2513_v11, %v451_v27  ;;  %v405_v38 = vmul.f32 %v2482_v62, %v311_v31 }
 0x111   :  { %v1148_v37 = vmul.f32 %v2451_v51, %v127_v42  ;;  %v240_v15 = vmul.f32 %v2477_v61, %v127_v42 }
 0x112   :  { %1365 = vadd.xlane.f32.xlu1 %v1322_v46  ;;  %1875 = vmatmul.mubr.bf16.gmra.mrb[8].mxu0 %v531_v28  ;;  %v520_v17 = vmax.f32 %v488_v21, 0.0  ;;  %v241_v28 = vmul.f32 %v2477_v61, %v2536_v29 }
 0x113   :  { %v1217_v0 = vadd.f32 %v1185_v40, %v1148_v37  ;;  %v437_v50 = vadd.f32 %v405_v38, %v240_v15  ;;  %v2792_v40 = vpop.permute.xlu0 %378  ;;  %v1149_v37 = vmul.f32 %v2451_v51, %v2536_v29 }
 0x114   :  { %v2775_v25 = vpop.permute.xlu1 %206  ;;  %v539_v10 = vpack.c.bf16 %v521_v41, %v520_v17  ;;  %v422_v31 = vmul.f32 %v2482_v62, %v2792_v40 }
 0x115   :  { %v2778_v32 = vadd.f32 %v2467_v57, %v1217_v0  ;;  %v474_v41 = vadd.f32 %v2513_v11, %v437_v50  ;;  %v256_v29 = vmul.f32 %v2477_v61, %v2775_v25  ;;  %v1152_v50 = vmul.f32 %v2451_v51, %v2444_v49 }
 0x116   :  { %1891 = vmatmul.mubr.bf16.gmra.mrb[8].mxu1 %v539_v10  ;;  %v1191_v49 = vmul.f32 %v2456_v52, %v2532_v26 }
 0x117   :  { %v3746_v27 = vmax.f32 %v2778_v32, 0.0 }
 0x118   :  { %v2782_v44 = vpop.permute.xlu1 %211 }
 0x119   :  { %v1323_v21 = vmul.f32 %v2496_v3, %v3746_v27  ;;  %v257_v46 = vmul.f32 %v2477_v61, %v2782_v44 }
 0x11b   :  { %1367 = vadd.xlane.f32.xlu0 %v1323_v21  ;;  %v454_v0 = vadd.f32 %v422_v31, %v257_v46  ;;  %v1189_v21 = vmul.f32 %v2456_v52, %v2484_v63  ;;  %v506_v46 = vmax.f32 %v474_v41, 0.0  ;;  %v319_v41 = vpop.permute.xlu0 %318 }
 0x11d   :  { %v315_v42 = vpop.permute.xlu1 %314  ;;  %v491_v31 = vadd.f32 %v2513_v11, %v454_v0 }
 0x11e   :  { %v406_v17 = vmul.f32 %v2482_v62, %v315_v42  ;;  %v1186_v38 = vmul.f32 %v2456_v52, %v315_v42 }
 0x120   :  { %v438_v10 = vadd.f32 %v406_v17, %v241_v28  ;;  %v1218_v15 = vadd.f32 %v1186_v38, %v1149_v37  ;;  %v1153_v17 = vmul.f32 %v2451_v51, %v2460_v54  ;;  %v1221_v38 = vadd.f32 %v1189_v21, %v1152_v50 }
 0x121   :  { %v2803_v27 = vpop.permute.xlu1 %374  ;;  %v1187_v54 = vmul.f32 %v2456_v52, %v319_v41 }
 0x122   :  { %v421_v6 = vmul.f32 %v2482_v62, %v2803_v27  ;;  %v2810_v34 = vadd.f32 %v2467_v57, %v1218_v15  ;;  %v475_v42 = vadd.f32 %v2513_v11, %v438_v10  ;;  %v1154_v15 = vmul.f32 %v2451_v51, %v2469_v59 }
 0x123   :  { %v1190_v10 = vmul.f32 %v2456_v52, %v2503_v8  ;;  %v523_v8 = vmax.f32 %v491_v31, 0.0  ;;  %v2832_v26 = vadd.f32 %v2467_v57, %v1221_v38  ;;  %v1192_v31 = vmul.f32 %v2456_v52, %v2542_v33 }
 0x124   :  { %3768 = vst [vmem:[#allocation8_spill] sm:$0xff] %v2810_v34  ;;  %v453_v28 = vadd.f32 %v421_v6, %v256_v29  ;;  %v3752_v63 = vmax.f32 %v2810_v34, 0.0  ;;  %v507_v37 = vmax.f32 %v475_v42, 0.0  ;;  %v1223_v48 = vadd.f32 %v1191_v49, %v1154_v15 }
 0x125   :  { %v1222_v14 = vadd.f32 %v1190_v10, %v1153_v17  ;;  %v1195_v17 = vmul.f32 %v2456_v52, %v2658_v45  ;;  %v3753_v10 = vmax.f32 %v2832_v26, 0.0  ;;  %v1158_v45 = vmul.f32 %v2451_v51, %v2515_v13 }
 0x126   :  { %v137_v6 = vpop.permute.xlu1 %136  ;;  %v1324_v29 = vmul.f32 %v2496_v3, %v3752_v63  ;;  %v532_v0 = vpack.c.bf16 %v507_v37, %v506_v46  ;;  %v490_v42 = vadd.f32 %v2513_v11, %v453_v28  ;;  %v1193_v46 = vmul.f32 %v2456_v52, %v2585_v39 }
 0x127   :  { %v1150_v21 = vmul.f32 %v2451_v51, %v137_v6  ;;  %v1156_v37 = vmul.f32 %v2451_v51, %v2500_v5  ;;  %v242_v38 = vmul.f32 %v2477_v61, %v137_v6  ;;  %v1155_v39 = vmul.f32 %v2451_v51, %v2518_v16 }
 0x128   :  { %1369 = vadd.xlane.f32.xlu1 %v1324_v29  ;;  %1878 = vmatprep.mubr.bf16.mxu0 %v532_v0  ;;  %v522_v59 = vmax.f32 %v490_v42, 0.0  ;;  %v2855_v5 = vadd.f32 %v2467_v57, %v1223_v48  ;;  %v2858_v33 = vadd.f32 %v2467_v57, %v1222_v14  ;;  %v407_v6 = vmul.f32 %v2482_v62, %v319_v41  ;;  %v2866_v42 = vpop.permute.xlu0 %386 }
 0x129   :  { %v1219_v50 = vadd.f32 %v1187_v54, %v1150_v21  ;;  %v1224_v0 = vadd.f32 %v1192_v31, %v1155_v39  ;;  %v1227_v16 = vadd.f32 %v1195_v17, %v1158_v45  ;;  %v1327_v48 = vmul.f32 %v2496_v3, %v3753_v10 }
 0x12a   :  { %v2834_v34 = vpop.permute.xlu1 %216  ;;  %v540_v63 = vpack.c.bf16 %v523_v8, %v522_v59  ;;  %v439_v54 = vadd.f32 %v407_v6, %v242_v38  ;;  %v243_v13 = vmul.f32 %v2477_v61, %v2548_v36  ;;  %v1292_v41 = vmax.f32 %v2855_v5, 0.0 }
 0x12b   :  { %v2839_v28 = vadd.f32 %v2467_v57, %v1219_v50  ;;  %v1291_v21 = vmax.f32 %v2858_v33, 0.0  ;;  %v1151_v59 = vmul.f32 %v2451_v51, %v2548_v36  ;;  %v1194_v8 = vmul.f32 %v2456_v52, %v2598_v19  ;;  %v3107_v33 = vld [vmem:[%s3732_s2 + $0x3] ss:$0 sm:$0xff] }
 0x12c   :  { %1894 = vmatprep.mubr.bf16.mxu1 %v540_v63  ;;  %v1225_v63 = vadd.f32 %v1193_v46, %v1156_v37  ;;  %v1197_v50 = vmul.f32 %v2456_v52, %v2713_v58  ;;  %v424_v31 = vmul.f32 %v2482_v62, %v2866_v42  ;;  %v2891_v39 = vadd.f32 %v2467_v57, %v1224_v0 }
 0x12d   :  { %v3754_v15 = vmax.f32 %v2839_v28, 0.0  ;;  %v1157_v36 = vmul.f32 %v2451_v51, %v2560_v60  ;;  %v1160_v19 = vmul.f32 %v2451_v51, %v2688_v35  ;;  %v476_v58 = vadd.f32 %v2513_v11, %v439_v54 }
 0x12e   :  { %v2852_v49 = vpop.permute.xlu1 %221  ;;  %v2884_v37 = vadd.f32 %v2467_v57, %v1225_v63  ;;  %v2899_v45 = vadd.f32 %v2467_v57, %v1227_v16  ;;  %v1329_v0 = vmul.f32 %v2496_v3, %v1292_v41  ;;  %v1199_v60 = vmul.f32 %v2456_v52, %v2757_v43 }
 0x12f   :  { %v1325_v29 = vmul.f32 %v2496_v3, %v3754_v15  ;;  %v259_v14 = vmul.f32 %v2477_v61, %v2852_v49  ;;  %v1229_v10 = vadd.f32 %v1197_v50, %v1160_v19  ;;  %v258_v54 = vmul.f32 %v2477_v61, %v2834_v34 }
 0x130   :  { %v1294_v35 = vmax.f32 %v2884_v37, 0.0  ;;  %v508_v43 = vmax.f32 %v476_v58, 0.0 }
 0x131   :  { %1371 = vadd.xlane.f32.xlu0 %v1325_v29  ;;  %v456_v63 = vadd.f32 %v424_v31, %v259_v14  ;;  %v1196_v14 = vmul.f32 %v2456_v52, %v2676_v23 }
 0x132   :  { %v1331_v23 = vmul.f32 %v2496_v3, %v1294_v35 }
 0x133   :  { %v323_v46 = vpop.permute.xlu1 %322 }
 0x134   :  { %v408_v17 = vmul.f32 %v2482_v62, %v323_v46  ;;  %v1188_v38 = vmul.f32 %v2456_v52, %v323_v46  ;;  %v1226_v46 = vadd.f32 %v1194_v8, %v1157_v36  ;;  %v3764_v8 = vmax.f32 %v2899_v45, 0.0 }
 0x135   :  { %1375 = vadd.xlane.f32.xlu0 %v1327_v48  ;;  %v1159_v36 = vmul.f32 %v2451_v51, %v2620_v56 }
 0x136   :  { %v440_v6 = vadd.f32 %v408_v17, %v243_v13  ;;  %v1220_v29 = vadd.f32 %v1188_v38, %v1151_v59  ;;  %v1162_v59 = vmul.f32 %v2451_v51, %v2731_v18  ;;  %v1201_v38 = vmul.f32 %v2456_v52, %v2803_v27 }
 0x137   :  { %v383_v15 = vpop.permute.xlu1 %382  ;;  %v2927_v18 = vadd.f32 %v2467_v57, %v1229_v10  ;;  %v1164_v27 = vmul.f32 %v2451_v51, %v2775_v25  ;;  %v1293_v10 = vmax.f32 %v2891_v39, 0.0 }
 0x138   :  { %v423_v16 = vmul.f32 %v2482_v62, %v383_v15  ;;  %v2911_v48 = vadd.f32 %v2467_v57, %v1220_v29  ;;  %v477_v13 = vadd.f32 %v2513_v11, %v440_v6  ;;  %v493_v62 = vadd.f32 %v2513_v11, %v456_v63 }
 0x139   :  { %1379 = vadd.xlane.f32.xlu0 %v1329_v0  ;;  %v1231_v17 = vadd.f32 %v1199_v60, %v1162_v59  ;;  %v1328_v6 = vmul.f32 %v2496_v3, %v1291_v21  ;;  %v1228_v29 = vadd.f32 %v1196_v14, %v1159_v36  ;;  %v1233_v60 = vadd.f32 %v1201_v38, %v1164_v27 }
 0x13a   :  { %v455_v50 = vadd.f32 %v423_v16, %v258_v54  ;;  %v1289_v61 = vmax.f32 %v2911_v48, 0.0  ;;  %v509_v31 = vmax.f32 %v477_v13, 0.0  ;;  %v525_v0 = vmax.f32 %v493_v62, 0.0 }
 0x13b   :  { %v1203_v54 = vmul.f32 %v2456_v52, %v383_v15  ;;  %v3762_v25 = vmax.f32 %v2927_v18, 0.0  ;;  %v2947_v16 = vadd.f32 %v2467_v57, %v1231_v17  ;;  %v1198_v13 = vmul.f32 %v2456_v52, %v2700_v22 }
 0x13c   :  { %v492_v19 = vadd.f32 %v2513_v11, %v455_v50  ;;  %v1326_v58 = vmul.f32 %v2496_v3, %v1289_v61  ;;  %v533_v63 = vpack.c.bf16 %v509_v31, %v508_v43  ;;  %v1333_v11 = vmul.f32 %v2496_v3, %v3764_v8 }
 0x13d   :  { %1383 = vadd.xlane.f32.xlu0 %v1331_v23  ;;  %v1161_v14 = vmul.f32 %v2451_v51, %v2696_v9  ;;  %v2954_v43 = vadd.f32 %v2467_v57, %v1226_v46  ;;  %v1166_v50 = vmul.f32 %v2451_v51, %v2834_v34  ;;  %v2959_v15 = vadd.f32 %v2467_v57, %v1228_v29 }
 0x13e   :  { %1373 = vadd.xlane.f32.xlu1 %v1326_v58  ;;  %1879 = vmatmul.mubr.bf16.gmra.mrb[12].mxu0 %v533_v63  ;;  %v524_v56 = vmax.f32 %v492_v19, 0.0  ;;  %v1335_v22 = vmul.f32 %v2496_v3, %v3762_v25  ;;  %v3760_v9 = vmax.f32 %v2947_v16, 0.0  ;;  %v2966_v62 = vadd.f32 %v2467_v57, %v1233_v60 }
 0x13f   :  { %v1235_v31 = vadd.f32 %v1203_v54, %v1166_v50  ;;  %v1230_v46 = vadd.f32 %v1198_v13, %v1161_v14  ;;  %v1163_v34 = vmul.f32 %v2451_v51, %v2739_v24  ;;  %v1330_v17 = vmul.f32 %v2496_v3, %v1293_v10 }
 0x140   :  { %v541_v59 = vpack.c.bf16 %v525_v0, %v524_v56  ;;  %v1295_v38 = vmax.f32 %v2954_v43, 0.0  ;;  %v1200_v23 = vmul.f32 %v2456_v52, %v2748_v53  ;;  %v1337_v36 = vmul.f32 %v2496_v3, %v3760_v9 }
 0x141   :  { %1387 = vadd.xlane.f32.xlu0 %v1333_v11  ;;  %v3758_v19 = vmax.f32 %v2966_v62, 0.0  ;;  %v3763_v58 = vmax.f32 %v2959_v15, 0.0  ;;  %v2982_v24 = vadd.f32 %v2467_v57, %v1235_v31  ;;  %v1165_v27 = vmul.f32 %v2451_v51, %v2782_v44 }
 0x142   :  { %1377 = vadd.xlane.f32.xlu1 %v1328_v6  ;;  %1895 = vmatmul.mubr.bf16.gmra.mrb[12].mxu1 %v541_v59  ;;  %v1232_v63 = vadd.f32 %v1200_v23, %v1163_v34  ;;  %v1332_v53 = vmul.f32 %v2496_v3, %v1295_v38  ;;  %v2990_v6 = vadd.f32 %v2467_v57, %v1230_v46 }
 0x143   :  { %v1202_v29 = vmul.f32 %v2456_v52, %v2792_v40  ;;  %v1339_v11 = vmul.f32 %v2496_v3, %v3758_v19  ;;  %v1334_v44 = vmul.f32 %v2496_v3, %v3763_v58  ;;  %v3756_v56 = vmax.f32 %v2982_v24, 0.0 }
 0x144   :  { %v1167_v60 = vmul.f32 %v2451_v51, %v2852_v49  ;;  %v3761_v54 = vmax.f32 %v2990_v6, 0.0  ;;  %v3005_v13 = vadd.f32 %v2467_v57, %v1232_v63  ;;  %v1204_v40 = vmul.f32 %v2456_v52, %v2866_v42  ;;  %v3018_v51 = vld [vmem:[%s3732_s2 + $0x9] ss:$0 sm:$0xff] }
 0x145   :  { %1391 = vadd.xlane.f32.xlu0 %v1335_v22  ;;  %v1234_v0 = vadd.f32 %v1202_v29, %v1165_v27  ;;  %v1341_v14 = vmul.f32 %v2496_v3, %v3756_v56  ;;  %v3769_v52 = vmax.f32 %v2491_v2, 0.0  ;;  %v3771_v63 = vmax.f32 %v2592_v55, 0.0 }
 0x146   :  { %1381 = vadd.xlane.f32.xlu1 %v1330_v17  ;;  %v1236_v59 = vadd.f32 %v1204_v40, %v1167_v60  ;;  %v1336_v50 = vmul.f32 %v2496_v3, %v3761_v54  ;;  %v3759_v49 = vmax.f32 %v3005_v13, 0.0  ;;  %v3770_v17 = vmax.f32 %v2539_v30, 0.0 }
 0x147   :  { %v3022_v31 = vadd.f32 %v2467_v57, %v1234_v0  ;;  %v1478_v42 = vmul.f32 %v3018_v51, %v3769_v52  ;;  %v1482_v27 = vmul.f32 %v3018_v51, %v3771_v63  ;;  %v3772_v30 = vmax.f32 %v2663_v4, 0.0 }
 0x148   :  { %v1338_v22 = vmul.f32 %v2496_v3, %v3759_v49  ;;  %v3032_v34 = vadd.f32 %v2467_v57, %v1236_v59  ;;  %v1480_v23 = vmul.f32 %v3018_v51, %v3770_v17  ;;  %v3773_v29 = vmax.f32 %v2607_v12, 0.0  ;;  %v3779_v59 = vld [vmem:[#allocation5_spill] sm:$0xff] }
 0x149   :  { %1395 = vadd.xlane.f32.xlu0 %v1337_v36  ;;  %v3757_v46 = vmax.f32 %v3022_v31, 0.0  ;;  %v3774_v55 = vmax.f32 %v2667_v7, 0.0  ;;  %v3775_v0 = vmax.f32 %v2625_v1, 0.0  ;;  %v3776_v4 = vmax.f32 %v2734_v47, 0.0 }
 0x14a   :  { %1385 = vadd.xlane.f32.xlu1 %v1332_v53  ;;  %v3755_v36 = vmax.f32 %v3032_v34, 0.0  ;;  %v1484_v53 = vmul.f32 %v3018_v51, %v3772_v30  ;;  %v3777_v12 = vmax.f32 %v2636_v20, 0.0  ;;  %v3778_v7 = vmax.f32 %v2778_v32, 0.0 }
 0x14b   :  { %v1340_v2 = vmul.f32 %v2496_v3, %v3757_v46  ;;  %v1488_v60 = vmul.f32 %v3018_v51, %v3776_v4  ;;  %v3780_v1 = vmax.f32 %v3779_v59, 0.0  ;;  %v3781_v47 = vmax.f32 %v2839_v28, 0.0 }
 0x14c   :  { %v1342_v57 = vmul.f32 %v2496_v3, %v3755_v36  ;;  %v1481_v3 = vmul.f32 %v3018_v51, %v3775_v0  ;;  %v1483_v40 = vmul.f32 %v3018_v51, %v3777_v12  ;;  %v3784_v32 = vmax.f32 %v2832_v26, 0.0  ;;  %v3122_v12 = vld [vmem:[%s3732_s2 + $0x4] ss:$0 sm:$0xff]  ;;  %s1823_s2 = sld [smem:[#allocation2 + $0x1]] }
 0x14d   :  { %1399 = vadd.xlane.f32.xlu0 %v1339_v11  ;;  %v1479_v11 = vmul.f32 %v3018_v51, %v3773_v29  ;;  %v1492_v52 = vmul.f32 %v3018_v51, %v3781_v47  ;;  %v1496_v28 = vmul.f32 %v3018_v51, %v1292_v41  ;;  %v1498_v26 = vmul.f32 %v3018_v51, %v1294_v35 }
 0x14e   :  { %1389 = vadd.xlane.f32.xlu1 %v1334_v44  ;;  %v1486_v44 = vmul.f32 %v3018_v51, %v3774_v55  ;;  %v1494_v17 = vmul.f32 %v3018_v51, %v3784_v32  ;;  %v1495_v5 = vmul.f32 %v3018_v51, %v1291_v21  ;;  %v1497_v41 = vmul.f32 %v3018_v51, %v1293_v10  ;;  %v3109_v21 = vpop.xlane.xlu0 %1343 }
 0x14f   :  { %v1499_v37 = vmul.f32 %v3018_v51, %v1295_v38 }
 0x151   :  { %1403 = vadd.xlane.f32.xlu0 %v1341_v14  ;;  %v1490_v14 = vmul.f32 %v3018_v51, %v3778_v7 }
 0x152   :  { %1393 = vadd.xlane.f32.xlu1 %v1336_v50  ;;  %v1485_v50 = vmul.f32 %v3018_v51, %v3780_v1 }
 0x155   :  { %1510 = vadd.xlane.f32.xlu0 %v1478_v42  ;;  %v3782_v42 = vld [vmem:[#allocation6_spill] sm:$0xff] }
 0x156   :  { %1397 = vadd.xlane.f32.xlu1 %v1338_v22  ;;  %v3783_v20 = vmax.f32 %v3782_v42, 0.0 }
 0x158   :  { %v1487_v22 = vmul.f32 %v3018_v51, %v3783_v20 }
 0x159   :  { %1514 = vadd.xlane.f32.xlu0 %v1480_v23  ;;  %v3785_v23 = vld [vmem:[#allocation7_spill] sm:$0xff] }
 0x15a   :  { %1401 = vadd.xlane.f32.xlu1 %v1340_v2  ;;  %v3786_v2 = vmax.f32 %v3785_v23, 0.0 }
 0x15c   :  { %v1489_v63 = vmul.f32 %v3018_v51, %v3786_v2 }
 0x15d   :  { %1518 = vadd.xlane.f32.xlu0 %v1482_v27  ;;  %v3787_v27 = vld [vmem:[#allocation8_spill] sm:$0xff] }
 0x15e   :  { %1405 = vadd.xlane.f32.xlu1 %v1342_v57  ;;  %v3788_v57 = vmax.f32 %v3787_v27, 0.0 }
 0x160   :  { %v1491_v30 = vmul.f32 %v3018_v51, %v3788_v57 }
 0x161   :  { %1522 = vadd.xlane.f32.xlu0 %v1484_v53  ;;  %v1493_v53 = vmul.f32 %v3018_v51, %v1289_v61 }
 0x162   :  { %1512 = vadd.xlane.f32.xlu1 %v1479_v11 }
 0x165   :  { %1526 = vadd.xlane.f32.xlu0 %v1486_v44 }
 0x166   :  { %1516 = vadd.xlane.f32.xlu1 %v1481_v3 }
 0x169   :  { %1530 = vadd.xlane.f32.xlu0 %v1488_v60  ;;  %v3111_v11 = vpop.xlane.xlu1 %1345  ;;  %v3117_v60 = vpop.xlane.xlu0 %1347 }
 0x16a   :  { %1520 = vadd.xlane.f32.xlu1 %v1483_v40 }
 0x16d   :  { %1534 = vadd.xlane.f32.xlu0 %v1490_v14  ;;  %v3130_v42 = vpop.xlane.xlu0 %1351 }
 0x16e   :  { %1524 = vadd.xlane.f32.xlu1 %v1485_v50 }
 0x171   :  { %1538 = vadd.xlane.f32.xlu0 %v1492_v52  ;;  %v3128_v52 = vpop.xlane.xlu1 %1349 }
 0x172   :  { %1528 = vadd.xlane.f32.xlu1 %v1487_v22 }
 0x175   :  { %1542 = vadd.xlane.f32.xlu0 %v1494_v17 }
 0x176   :  { %1532 = vadd.xlane.f32.xlu1 %v1489_v63  ;;  %v3136_v63 = vpop.xlane.xlu0 %1355 }
 0x179   :  { %1546 = vadd.xlane.f32.xlu0 %v1496_v28  ;;  %v3138_v28 = vpop.xlane.xlu1 %1353 }
 0x17a   :  { %1536 = vadd.xlane.f32.xlu1 %v1491_v30 }
 0x17d   :  { %1550 = vadd.xlane.f32.xlu0 %v1498_v26 }
 0x17e   :  { %1540 = vadd.xlane.f32.xlu1 %v1493_v53 }
 0x182   :  { %1544 = vadd.xlane.f32.xlu1 %v1495_v5 }
 0x186   :  { %1548 = vadd.xlane.f32.xlu1 %v1497_v41  ;;  %v3143_v41 = vpop.xlane.xlu0 %1359 }
 0x18a   :  { %1552 = vadd.xlane.f32.xlu1 %v1499_v37 }
 0x19d   :  { %v1884_v35 = vpop.f32.mrb[0].mxu1 }
 0x19e   :  { %v709_v48 = vpop.f32.mrb[1].mxu1  ;;  %v718_v10 = vadd.f32 %v1884_v35, %v3107_v33 }
 0x19f   :  { %v1885_v61 = vpop.f32.mrb[2].mxu1  ;;  %v710_v14 = vadd.f32 %v3107_v33, %v709_v48 }
 0x1a0   :  { %v712_v29 = vpop.f32.mrb[3].mxu1  ;;  %v790_v7 = vmax.f32 %v718_v10, 0.0  ;;  %v721_v1 = vadd.f32 %v1885_v61, %v3107_v33  ;;  %v3147_v61 = vpop.xlane.xlu1 %1357 }
 0x1a1   :  { %v788_v22 = vmax.f32 %v710_v14, 0.0  ;;  %v713_v23 = vadd.f32 %v3107_v33, %v712_v29 }
 0x1a2   :  { %v827_v20 = vmul.f32 %v3122_v12, %v790_v7  ;;  %v791_v17 = vmax.f32 %v721_v1, 0.0 }
 0x1a3   :  { %v825_v27 = vmul.f32 %v3122_v12, %v788_v22  ;;  %v789_v26 = vmax.f32 %v713_v23, 0.0 }
 0x1a4   :  { %v828_v30 = vmul.f32 %v3122_v12, %v791_v17 }
 0x1a5   :  { %v826_v37 = vmul.f32 %v3122_v12, %v789_v26 }
 0x1a8   :  { %v1868_v39 = vpop.f32.mrb[0].mxu0 }
 0x1a9   :  { %v654_v43 = vadd.f32 %v1868_v39, %v3107_v33  ;;  %v645_v38 = vpop.f32.mrb[1].mxu0 }
 0x1aa   :  { %v646_v55 = vadd.f32 %v3107_v33, %v645_v38  ;;  %v1869_v44 = vpop.f32.mrb[2].mxu0  ;;  %v3150_v38 = vpop.xlane.xlu0 %1363 }
 0x1ab   :  { %v774_v0 = vmax.f32 %v654_v43, 0.0  ;;  %v657_v3 = vadd.f32 %v1869_v44, %v3107_v33  ;;  %v648_v4 = vpop.f32.mrb[3].mxu0 }
 0x1ac   :  { %v772_v40 = vmax.f32 %v646_v55, 0.0  ;;  %v649_v32 = vadd.f32 %v3107_v33, %v648_v4 }
 0x1ad   :  { %v811_v59 = vmul.f32 %v3122_v12, %v774_v0  ;;  %v775_v47 = vmax.f32 %v657_v3, 0.0  ;;  %v3153_v0 = vpop.xlane.xlu1 %1361 }
 0x1ae   :  { %v809_v50 = vmul.f32 %v3122_v12, %v772_v40  ;;  %v773_v57 = vmax.f32 %v649_v32, 0.0  ;;  %v3156_v40 = vpop.xlane.xlu0 %1367 }
 0x1af   :  { %845 = vadd.xlane.f32.xlu0 %v811_v59  ;;  %v812_v2 = vmul.f32 %v3122_v12, %v775_v47 }
 0x1b0   :  { %841 = vadd.xlane.f32.xlu1 %v809_v50  ;;  %v810_v53 = vmul.f32 %v3122_v12, %v773_v57 }
 0x1b1   :  { %v3160_v1 = vpop.xlane.xlu1 %1365 }
 0x1b3   :  { %877 = vadd.xlane.f32.xlu0 %v827_v20 }
 0x1b4   :  { %847 = vadd.xlane.f32.xlu1 %v812_v2 }
 0x1b7   :  { %873 = vadd.xlane.f32.xlu0 %v825_v27 }
 0x1b8   :  { %879 = vadd.xlane.f32.xlu1 %v828_v30  ;;  %v3168_v30 = vpop.xlane.xlu1 %1369 }
 0x1b9   :  { %v1872_v5 = vpop.f32.mrb[4].mxu0 }
 0x1ba   :  { %v670_v35 = vadd.f32 %v1872_v5, %v3107_v33  ;;  %v661_v48 = vpop.f32.mrb[5].mxu0 }
 0x1bb   :  { %843 = vadd.xlane.f32.xlu0 %v810_v53  ;;  %v1873_v29 = vpop.f32.mrb[6].mxu0  ;;  %v662_v7 = vadd.f32 %v3107_v33, %v661_v48 }
 0x1bc   :  { %v778_v39 = vmax.f32 %v670_v35, 0.0  ;;  %v673_v10 = vadd.f32 %v1873_v29, %v3107_v33  ;;  %875 = vadd.xlane.f32.xlu1 %v826_v37  ;;  %v664_v43 = vpop.f32.mrb[7].mxu0 }
 0x1bd   :  { %v665_v47 = vadd.f32 %v3107_v33, %v664_v43  ;;  %v776_v17 = vmax.f32 %v662_v7, 0.0 }
 0x1be   :  { %v815_v55 = vmul.f32 %v3122_v12, %v778_v39  ;;  %v779_v44 = vmax.f32 %v673_v10, 0.0  ;;  %v3164_v23 = vpop.xlane.xlu0 %1371 }
 0x1bf   :  { %3789 = vst [vmem:[#allocation5_spill] sm:$0xff] %v3164_v23  ;;  %v777_v26 = vmax.f32 %v665_v47, 0.0  ;;  %v813_v37 = vmul.f32 %v3122_v12, %v776_v17 }
 0x1c0   :  { %v816_v3 = vmul.f32 %v3122_v12, %v779_v44  ;;  %853 = vadd.xlane.f32.xlu0 %v815_v55 }
 0x1c1   :  { %v1888_v4 = vpop.f32.mrb[4].mxu1  ;;  %v814_v29 = vmul.f32 %v3122_v12, %v777_v26 }
 0x1c2   :  { %v734_v14 = vadd.f32 %v1888_v4, %v3107_v33  ;;  %v725_v59 = vpop.f32.mrb[5].mxu1  ;;  %855 = vadd.xlane.f32.xlu1 %v816_v3  ;;  %v3176_v39 = vpop.xlane.xlu0 %1375 }
 0x1c3   :  { %v1889_v50 = vpop.f32.mrb[6].mxu1  ;;  %v726_v27 = vadd.f32 %v3107_v33, %v725_v59 }
 0x1c4   :  { %v794_v20 = vmax.f32 %v734_v14, 0.0  ;;  %v737_v22 = vadd.f32 %v1889_v50, %v3107_v33  ;;  %v728_v32 = vpop.f32.mrb[7].mxu1 }
 0x1c5   :  { %v729_v5 = vadd.f32 %v3107_v33, %v728_v32  ;;  %v792_v35 = vmax.f32 %v726_v27, 0.0 }
 0x1c6   :  { %v831_v2 = vmul.f32 %v3122_v12, %v794_v20  ;;  %v795_v57 = vmax.f32 %v737_v22, 0.0  ;;  %v3182_v3 = vpop.xlane.xlu0 %1379 }
 0x1c7   :  { %v793_v10 = vmax.f32 %v729_v5, 0.0  ;;  %v829_v43 = vmul.f32 %v3122_v12, %v792_v35 }
 0x1c8   :  { %v832_v53 = vmul.f32 %v3122_v12, %v795_v57  ;;  %885 = vadd.xlane.f32.xlu0 %v831_v2 }
 0x1c9   :  { %v830_v44 = vmul.f32 %v3122_v12, %v793_v10 }
 0x1ca   :  { %887 = vadd.xlane.f32.xlu1 %v832_v53  ;;  %v3186_v7 = vpop.xlane.xlu0 %1383 }
 0x1cb   :  { %v3173_v48 = vpop.xlane.xlu1 %1373 }
 0x1cc   :  { %3790 = vst [vmem:[#allocation6_spill] sm:$0xff] %v3173_v48  ;;  %849 = vadd.xlane.f32.xlu0 %v813_v37 }
 0x1ce   :  { %851 = vadd.xlane.f32.xlu1 %v814_v29  ;;  %v3190_v59 = vpop.xlane.xlu0 %1387 }
 0x1cf   :  { %v3179_v55 = vpop.xlane.xlu1 %1377 }
 0x1d0   :  { %881 = vadd.xlane.f32.xlu0 %v829_v43 }
 0x1d2   :  { %883 = vadd.xlane.f32.xlu1 %v830_v44  ;;  %v3194_v47 = vpop.xlane.xlu0 %1391 }
 0x1d3   :  { %v3184_v4 = vpop.xlane.xlu1 %1381  ;;  %3791 = vst [vmem:[#allocation7_spill] sm:$0xff] %v3194_v47 }
 0x1d6   :  { %v3200_v5 = vpop.xlane.xlu0 %1395 }
 0x1d7   :  { %v3188_v14 = vpop.xlane.xlu1 %1385  ;;  %3793 = vst [vmem:[#allocation9_spill] sm:$0xff] %v3200_v5 }
 0x1db   :  { %v3192_v50 = vpop.xlane.xlu1 %1389 }
 0x1df   :  { %v3196_v20 = vpop.xlane.xlu1 %1393 }
 0x1e0   :  { %3792 = vst [vmem:[#allocation8_spill] sm:$0xff] %v3196_v20 }
 0x1e3   :  { %v3205_v44 = vpop.xlane.xlu1 %1397 }
 0x1e4   :  { %3794 = vst [vmem:[#allocation10_spill] sm:$0xff] %v3205_v44 }
 0x1e5   :  { %v1876_v22 = vpop.f32.mrb[8].mxu0 }
 0x1e6   :  { %v686_v32 = vadd.f32 %v1876_v22, %v3107_v33  ;;  %v677_v17 = vpop.f32.mrb[9].mxu0 }
 0x1e7   :  { %v1877_v2 = vpop.f32.mrb[10].mxu0  ;;  %v678_v35 = vadd.f32 %v3107_v33, %v677_v17 }
 0x1e8   :  { %v782_v27 = vmax.f32 %v686_v32, 0.0  ;;  %v689_v57 = vadd.f32 %v1877_v2, %v3107_v33  ;;  %v680_v26 = vpop.f32.mrb[11].mxu0 }
 0x1e9   :  { %v1892_v53 = vpop.f32.mrb[8].mxu1  ;;  %v681_v32 = vadd.f32 %v3107_v33, %v680_v26  ;;  %v780_v19 = vmax.f32 %v678_v35, 0.0  ;;  %v3216_v26 = vpop.xlane.xlu1 %1401 }
 0x1ea   :  { %v819_v37 = vmul.f32 %v3122_v12, %v782_v27  ;;  %v783_v29 = vmax.f32 %v689_v57, 0.0  ;;  %v750_v10 = vadd.f32 %v1892_v53, %v3107_v33  ;;  %v741_v43 = vpop.f32.mrb[9].mxu1  ;;  %v3212_v53 = vpop.xlane.xlu0 %1399  ;;  %3796 = vst [vmem:[#allocation12_spill] sm:$0xff] %v3216_v26 }
 0x1eb   :  { %v1893_v22 = vpop.f32.mrb[10].mxu1  ;;  %v742_v17 = vadd.f32 %v3107_v33, %v741_v43  ;;  %3795 = vst [vmem:[#allocation11_spill] sm:$0xff] %v3212_v53  ;;  %v781_v49 = vmax.f32 %v681_v32, 0.0 }
 0x1ec   :  { %v820_v36 = vmul.f32 %v3122_v12, %v783_v29  ;;  %v798_v2 = vmax.f32 %v750_v10, 0.0  ;;  %v753_v56 = vadd.f32 %v1893_v22, %v3107_v33  ;;  %v744_v46 = vpop.f32.mrb[11].mxu1  ;;  %861 = vadd.xlane.f32.xlu0 %v819_v37  ;;  %v817_v10 = vmul.f32 %v3122_v12, %v780_v19 }
 0x1ed   :  { %v745_v29 = vadd.f32 %v3107_v33, %v744_v46  ;;  %v796_v37 = vmax.f32 %v742_v17, 0.0  ;;  %v818_v35 = vmul.f32 %v3122_v12, %v781_v49  ;;  %v3223_v43 = vpop.xlane.xlu1 %1405 }
 0x1ee   :  { %v835_v27 = vmul.f32 %v3122_v12, %v798_v2  ;;  %v799_v57 = vmax.f32 %v753_v56, 0.0  ;;  %863 = vadd.xlane.f32.xlu1 %v820_v36  ;;  %v3220_v56 = vpop.xlane.xlu0 %1403  ;;  %3798 = vst [vmem:[#allocation14_spill] sm:$0xff] %v3223_v43 }
 0x1ef   :  { %v797_v22 = vmax.f32 %v745_v29, 0.0  ;;  %3797 = vst [vmem:[#allocation13_spill] sm:$0xff] %v3220_v56  ;;  %v833_v36 = vmul.f32 %v3122_v12, %v796_v37 }
 0x1f0   :  { %v836_v9 = vmul.f32 %v3122_v12, %v799_v57  ;;  %893 = vadd.xlane.f32.xlu0 %v835_v27 }
 0x1f1   :  { %v834_v46 = vmul.f32 %v3122_v12, %v797_v22  ;;  %v3228_v19 = vpop.xlane.xlu1 %1512 }
 0x1f2   :  { %895 = vadd.xlane.f32.xlu1 %v836_v9  ;;  %v3226_v32 = vpop.xlane.xlu0 %1510 }
 0x1f4   :  { %857 = vadd.xlane.f32.xlu0 %v817_v10 }
 0x1f5   :  { %v3232_v49 = vpop.xlane.xlu1 %1516 }
 0x1f6   :  { %859 = vadd.xlane.f32.xlu1 %v818_v35  ;;  %v3230_v9 = vpop.xlane.xlu0 %1514 }
 0x1f8   :  { %889 = vadd.xlane.f32.xlu0 %v833_v36 }
 0x1f9   :  { %v3236_v27 = vpop.xlane.xlu1 %1520 }
 0x1fa   :  { %891 = vadd.xlane.f32.xlu1 %v834_v46  ;;  %v3234_v2 = vpop.xlane.xlu0 %1518 }
 0x1fd   :  { %v3240_v57 = vpop.xlane.xlu1 %1524 }
 0x1fe   :  { %v3238_v17 = vpop.xlane.xlu0 %1522 }
 0x201   :  { %v3246_v25 = vpop.xlane.xlu1 %1528 }
 0x202   :  { %v3243_v22 = vpop.xlane.xlu0 %1526 }
 0x206   :  { %v3254_v47 = vpop.xlane.xlu0 %1530 }
 0x211   :  { %v1880_v29 = vpop.f32.mrb[12].mxu0 }
 0x212   :  { %v702_v10 = vadd.f32 %v1880_v29, %v3107_v33  ;;  %v693_v37 = vpop.f32.mrb[13].mxu0 }
 0x213   :  { %v1881_v35 = vpop.f32.mrb[14].mxu0  ;;  %v694_v43 = vadd.f32 %v3107_v33, %v693_v37 }
 0x214   :  { %v786_v36 = vmax.f32 %v702_v10, 0.0  ;;  %v705_v46 = vadd.f32 %v1881_v35, %v3107_v33  ;;  %v696_v54 = vpop.f32.mrb[15].mxu0 }
 0x215   :  { %v1896_v58 = vpop.f32.mrb[12].mxu1  ;;  %v697_v53 = vadd.f32 %v3107_v33, %v696_v54  ;;  %v784_v48 = vmax.f32 %v694_v43, 0.0 }
 0x216   :  { %v823_v8 = vmul.f32 %v3122_v12, %v786_v36  ;;  %v787_v26 = vmax.f32 %v705_v46, 0.0  ;;  %v766_v44 = vadd.f32 %v1896_v58, %v3107_v33  ;;  %v757_v20 = vpop.f32.mrb[13].mxu1  ;;  %v3258_v58 = vpop.xlane.xlu1 %1532 }
 0x217   :  { %v1897_v29 = vpop.f32.mrb[14].mxu1  ;;  %v758_v37 = vadd.f32 %v3107_v33, %v757_v20  ;;  %v785_v23 = vmax.f32 %v697_v53, 0.0 }
 0x218   :  { %v824_v56 = vmul.f32 %v3122_v12, %v787_v26  ;;  %v802_v10 = vmax.f32 %v766_v44, 0.0  ;;  %v769_v35 = vadd.f32 %v1897_v29, %v3107_v33  ;;  %869 = vadd.xlane.f32.xlu0 %v823_v8  ;;  %v760_v5 = vpop.f32.mrb[15].mxu1  ;;  %v821_v8 = vmul.f32 %v3122_v12, %v784_v48  ;;  %v3263_v29 = vpop.xlane.xlu0 %1534 }
 0x219   :  { %v761_v54 = vadd.f32 %v3107_v33, %v760_v5  ;;  %v800_v44 = vmax.f32 %v758_v37, 0.0  ;;  %v822_v43 = vmul.f32 %v3122_v12, %v785_v23  ;;  %v3801_v48 = vmax.f32 %v2899_v45, 0.0 }
 0x21a   :  { %v839_v36 = vmul.f32 %v3122_v12, %v802_v10  ;;  %v803_v46 = vmax.f32 %v769_v35, 0.0  ;;  %871 = vadd.xlane.f32.xlu1 %v824_v56  ;;  %v3266_v20 = vpop.xlane.xlu1 %1536  ;;  %v3803_v23 = vmax.f32 %v2959_v15, 0.0  ;;  %v3804_v37 = vmax.f32 %v2927_v18, 0.0 }
 0x21b   :  { %v801_v10 = vmax.f32 %v761_v54, 0.0  ;;  %3799 = vst [vmem:[#allocation15_spill] sm:$0xff] %v3266_v20  ;;  %v837_v56 = vmul.f32 %v3122_v12, %v800_v44  ;;  %v1500_v5 = vmul.f32 %v3018_v51, %v3801_v48  ;;  %v3805_v45 = vmax.f32 %v2990_v6, 0.0 }
 0x21c   :  { %v840_v26 = vmul.f32 %v3122_v12, %v803_v46  ;;  %901 = vadd.xlane.f32.xlu0 %v839_v36  ;;  %v3270_v33 = vpop.xlane.xlu0 %1538  ;;  %v1501_v36 = vmul.f32 %v3018_v51, %v3803_v23  ;;  %v3293_v44 = vstv %s1823_s2  ;;  %v3807_v18 = vmax.f32 %v3005_v13, 0.0 }
 0x21d   :  { %v838_v53 = vmul.f32 %v3122_v12, %v801_v10  ;;  %3800 = vst [vmem:[#allocation16_spill] sm:$0xff] %v3270_v33  ;;  %v1502_v12 = vmul.f32 %v3018_v51, %v3804_v37  ;;  %v3808_v6 = vmax.f32 %v2966_v62, 0.0  ;;  %v1411_v48 = vadd.f32 %v3293_v44, %v3117_v60 }
 0x21e   :  { %903 = vadd.xlane.f32.xlu1 %v840_v26  ;;  %v3275_v35 = vpop.xlane.xlu1 %1540  ;;  %v1503_v26 = vmul.f32 %v3018_v51, %v3805_v45  ;;  %v3809_v13 = vmax.f32 %v3022_v31, 0.0  ;;  %v1410_v62 = vadd.f32 %v3293_v44, %v3111_v11  ;;  %v1412_v23 = vadd.f32 %v3293_v44, %v3128_v52 }
 0x21f   :  { %3802 = vst [vmem:[#allocation17_spill] sm:$0xff] %v3275_v35  ;;  %v1415_v60 = vadd.f32 %v3293_v44, %v3136_v63  ;;  %v1416_v31 = vadd.f32 %v3293_v44, %v3147_v61  ;;  %v3811_v11 = vmax.f32 %v3032_v34, 0.0  ;;  %v1427_v63 = vadd.f32 %v3293_v44, %v3182_v3 }
 0x220   :  { %865 = vadd.xlane.f32.xlu0 %v821_v8  ;;  %v3283_v46 = vpop.xlane.xlu0 %1542  ;;  %v3806_v8 = vmax.f32 %v2947_v16, 0.0  ;;  %v1409_v16 = vadd.f32 %v3293_v44, %v3109_v21  ;;  %v3810_v21 = vmax.f32 %v2982_v24, 0.0  ;;  %v1425_v24 = vadd.f32 %v3293_v44, %v3176_v39 }
 0x221   :  { %v1509_v52 = vmul.f32 %v3018_v51, %v3811_v11  ;;  %v3334_v45 = vstv %s905_s9  ;;  %v1431_v61 = vadd.f32 %v3293_v44, %v3190_v59  ;;  %v3338_v34 = vstv %s1825_s10 }
 0x222   :  { %867 = vadd.xlane.f32.xlu1 %v822_v43  ;;  %v3288_v54 = vpop.xlane.xlu1 %1544  ;;  %v1504_v15 = vmul.f32 %v3018_v51, %v3806_v8  ;;  %v1505_v43 = vmul.f32 %v3018_v51, %v3807_v18  ;;  %1943 = vtanh.f32 %v1409_v16  ;;  %v1577_v11 = vadd.f32 %v3338_v34, %v3228_v19 }
 0x223   :  { %1945 = vtanh.f32 %v1411_v48 }
 0x224   :  { %897 = vadd.xlane.f32.xlu0 %v837_v56  ;;  %v3298_v10 = vpop.xlane.xlu0 %1546  ;;  %v1506_v56 = vmul.f32 %v3018_v51, %v3808_v6  ;;  %1947 = vtanh.f32 %v1410_v62 }
 0x225   :  { %1949 = vtanh.f32 %v1412_v23 }
 0x226   :  { %899 = vadd.xlane.f32.xlu1 %v838_v53  ;;  %v3305_v53 = vpop.xlane.xlu1 %1548  ;;  %1951 = vtanh.f32 %v1415_v60 }
 0x227   :  { %1953 = vtanh.f32 %v1416_v31 }
 0x228   :  { %1554 = vadd.xlane.f32.xlu0 %v1500_v5  ;;  %v1507_v5 = vmul.f32 %v3018_v51, %v3809_v13  ;;  %v3323_v37 = vpop.xlane.xlu0 %1550  ;;  %1955 = vtanh.f32 %v1425_v24 }
 0x229   :  { %1957 = vtanh.f32 %v1427_v63 }
 0x22a   :  { %1556 = vadd.xlane.f32.xlu1 %v1501_v36  ;;  %v1508_v36 = vmul.f32 %v3018_v51, %v3810_v21  ;;  %v1426_v51 = vadd.f32 %v3293_v44, %v3179_v55  ;;  %1959 = vtanh.f32 %v1431_v61  ;;  %v1579_v61 = vadd.f32 %v3338_v34, %v3232_v49 }
 0x22c   :  { %1558 = vadd.xlane.f32.xlu0 %v1502_v12  ;;  %v3330_v12 = vpop.xlane.xlu1 %1552  ;;  %1961 = vtanh.f32 %v1426_v51  ;;  %v3348_v55 = vpop.eup %1943 }
 0x22d   :  { %v3353_v13 = vpop.eup %1945 }
 0x22e   :  { %1560 = vadd.xlane.f32.xlu1 %v1503_v26  ;;  %v1428_v26 = vadd.f32 %v3293_v44, %v3184_v4  ;;  %v1578_v4 = vadd.f32 %v3338_v34, %v3230_v9  ;;  %v3358_v23 = vpop.eup %1947 }
 0x230   :  { %1562 = vadd.xlane.f32.xlu0 %v1504_v15  ;;  %v1576_v15 = vadd.f32 %v3338_v34, %v3226_v32  ;;  %1963 = vtanh.f32 %v1428_v26  ;;  %v1582_v32 = vadd.f32 %v3338_v34, %v3238_v17 }
 0x232   :  { %1564 = vadd.xlane.f32.xlu1 %v1505_v43  ;;  %1965 = vtanh.f32 %v1576_v15 }
 0x234   :  { %1566 = vadd.xlane.f32.xlu0 %v1506_v56 }
 0x236   :  { %1568 = vadd.xlane.f32.xlu1 %v1507_v5 }
 0x238   :  { %1570 = vadd.xlane.f32.xlu0 %v1508_v36  ;;  %v3360_v36 = vpop.eup %1949 }
 0x239   :  { %v3362_v31 = vpop.eup %1951 }
 0x23a   :  { %1572 = vadd.xlane.f32.xlu1 %v1509_v52  ;;  %v3367_v63 = vpop.eup %1953 }
 0x23b   :  { %v3372_v26 = vpop.eup %1955 }
 0x23c   :  { %v846_v39 = vpop.xlane.xlu0 %845 }
 0x23d   :  { %v909_v3 = vadd.f32 %v3334_v45, %v846_v39  ;;  %v842_v8 = vpop.xlane.xlu1 %841 }
 0x23e   :  { %v907_v59 = vadd.f32 %v3334_v45, %v842_v8  ;;  %v3374_v8 = vpop.eup %1957 }
 0x23f   :  { %v941_v18 = vsub.f32 0.0, %v909_v3 }
 0x240   :  { %v939_v43 = vsub.f32 0.0, %v907_v59  ;;  %v878_v6 = vpop.xlane.xlu0 %877  ;;  %v3376_v59 = vpop.eup %1959 }
 0x241   :  { %v975_v56 = vmul.f32 1.442695, %v941_v18  ;;  %v925_v16 = vadd.f32 %v3334_v45, %v878_v6  ;;  %v848_v48 = vpop.xlane.xlu1 %847  ;;  %v1592_v18 = vadd.f32 %v3338_v34, %v3283_v46 }
 0x242   :  { %v971_v5 = vmul.f32 1.442695, %v939_v43  ;;  %v910_v62 = vadd.f32 %v3334_v45, %v848_v48 }
 0x243   :  { %1967 = vpow2.f32 %v975_v56  ;;  %v957_v21 = vsub.f32 0.0, %v925_v16  ;;  %v1594_v56 = vadd.f32 %v3338_v34, %v3298_v10 }
 0x244   :  { %1969 = vpow2.f32 %v971_v5  ;;  %v942_v9 = vsub.f32 0.0, %v910_v62  ;;  %v874_v60 = vpop.xlane.xlu0 %873 }
 0x245   :  { %1971 = vtanh.f32 %v1578_v4  ;;  %v1007_v52 = vmul.f32 1.442695, %v957_v21  ;;  %v923_v17 = vadd.f32 %v3334_v45, %v874_v60  ;;  %v880_v24 = vpop.xlane.xlu1 %879  ;;  %v3381_v4 = vpop.eup %1961 }
 0x246   :  { %1973 = vtanh.f32 %v1582_v32  ;;  %v977_v51 = vmul.f32 1.442695, %v942_v9  ;;  %v926_v39 = vadd.f32 %v3334_v45, %v880_v24  ;;  %v3386_v32 = vpop.eup %1963 }
 0x247   :  { %1975 = vpow2.f32 %v1007_v52  ;;  %v955_v3 = vsub.f32 0.0, %v923_v17  ;;  %v3388_v62 = vpop.eup %1965 }
 0x248   :  { %1977 = vpow2.f32 %v977_v51  ;;  %v958_v19 = vsub.f32 0.0, %v926_v39  ;;  %v844_v15 = vpop.xlane.xlu0 %843 }
 0x249   :  { %1979 = vtanh.f32 %v1577_v11  ;;  %v1003_v43 = vmul.f32 1.442695, %v955_v3  ;;  %v908_v49 = vadd.f32 %v3334_v45, %v844_v15  ;;  %v876_v6 = vpop.xlane.xlu1 %875 }
 0x24a   :  { %1981 = vtanh.f32 %v1579_v61  ;;  %v1009_v16 = vmul.f32 1.442695, %v958_v19  ;;  %v924_v48 = vadd.f32 %v3334_v45, %v876_v6  ;;  %v1593_v61 = vadd.f32 %v3338_v34, %v3288_v54 }
 0x24b   :  { %1983 = vpow2.f32 %v1003_v43  ;;  %v940_v5 = vsub.f32 0.0, %v908_v49 }
 0x24c   :  { %1985 = vpow2.f32 %v1009_v16  ;;  %v956_v46 = vsub.f32 0.0, %v924_v48 }
 0x24d   :  { %v1968_v21 = vpop.eup %1967  ;;  %1987 = vtanh.f32 %v1592_v18  ;;  %v973_v9 = vmul.f32 1.442695, %v940_v5  ;;  %v854_v60 = vpop.xlane.xlu0 %853 }
 0x24e   :  { %v1970_v11 = vpop.eup %1969  ;;  %1989 = vtanh.f32 %v1594_v56  ;;  %v1037_v52 = vadd.f32 1.0, %v1968_v21  ;;  %v1005_v17 = vmul.f32 1.442695, %v956_v46  ;;  %v913_v10 = vadd.f32 %v3334_v45, %v854_v60 }
 0x24f   :  { %v1972_v24 = vpop.eup %1971  ;;  %v1035_v51 = vadd.f32 1.0, %v1970_v11  ;;  %1991 = vpow2.f32 %v973_v9  ;;  %v856_v39 = vpop.xlane.xlu1 %855 }
 0x250   :  { %v3393_v3 = vpop.eup %1973  ;;  %1993 = vrcp.f32 %v1037_v52  ;;  %v945_v19 = vsub.f32 0.0, %v913_v10  ;;  %v914_v15 = vadd.f32 %v3334_v45, %v856_v39 }
 0x251   :  { %v1976_v18 = vpop.eup %1975  ;;  %1995 = vrcp.f32 %v1035_v51 }
 0x252   :  { %v1978_v43 = vpop.eup %1977  ;;  %v1053_v49 = vadd.f32 1.0, %v1976_v18  ;;  %1997 = vpow2.f32 %v1005_v17  ;;  %v983_v6 = vmul.f32 1.442695, %v945_v19  ;;  %v946_v56 = vsub.f32 0.0, %v914_v15 }
 0x253   :  { %v3396_v16 = vpop.eup %1979  ;;  %1999 = vtanh.f32 %v1593_v61  ;;  %v1038_v54 = vadd.f32 1.0, %v1978_v43  ;;  %v1595_v17 = vadd.f32 %v3338_v34, %v3305_v53  ;;  %v1583_v53 = vadd.f32 %v3338_v34, %v3240_v57 }
 0x254   :  { %v3398_v48 = vpop.eup %1981  ;;  %2001 = vrcp.f32 %v1053_v49  ;;  %v985_v5 = vmul.f32 1.442695, %v946_v56 }
 0x255   :  { %v1984_v46 = vpop.eup %1983  ;;  %2003 = vrcp.f32 %v1038_v54  ;;  %v886_v21 = vpop.xlane.xlu0 %885 }
 0x256   :  { %v1986_v9 = vpop.eup %1985  ;;  %v1051_v60 = vadd.f32 1.0, %v1984_v46  ;;  %2005 = vpow2.f32 %v983_v6  ;;  %v929_v11 = vadd.f32 %v3334_v45, %v886_v21 }
 0x257   :  { %v3401_v52 = vpop.eup %1987  ;;  %v1054_v10 = vadd.f32 1.0, %v1986_v9  ;;  %2007 = vpow2.f32 %v985_v5  ;;  %v888_v61 = vpop.xlane.xlu1 %887 }
 0x258   :  { %v1990_v51 = vpop.eup %1989  ;;  %2009 = vrcp.f32 %v1051_v60  ;;  %v961_v39 = vsub.f32 0.0, %v929_v11  ;;  %v930_v19 = vadd.f32 %v3334_v45, %v888_v61 }
 0x259   :  { %v1992_v15 = vpop.eup %1991  ;;  %2011 = vrcp.f32 %v1054_v10  ;;  %v850_v18 = vpop.xlane.xlu0 %849 }
 0x25a   :  { %v1994_v43 = vpop.eup %1993  ;;  %v1036_v49 = vadd.f32 1.0, %v1992_v15  ;;  %v1015_v6 = vmul.f32 1.442695, %v961_v39  ;;  %v962_v56 = vsub.f32 0.0, %v930_v19  ;;  %v911_v54 = vadd.f32 %v3334_v45, %v850_v18 }
 0x25b   :  { %v1996_v46 = vpop.eup %1995  ;;  %2013 = vtanh.f32 %v1595_v17  ;;  %v1642_v5 = vmul.f32 %v1994_v43, %v3353_v13  ;;  %v1674_v21 = vsub.f32 1.0, %v1994_v43  ;;  %v852_v9 = vpop.xlane.xlu1 %851 }
 0x25c   :  { %v1998_v60 = vpop.eup %1997  ;;  %v1640_v11 = vmul.f32 %v1996_v46, %v3348_v55  ;;  %v1672_v10 = vsub.f32 1.0, %v1996_v46  ;;  %2015 = vrcp.f32 %v1036_v49  ;;  %v1017_v61 = vmul.f32 1.442695, %v962_v56 }
 0x25d   :  { %v3411_v15 = vpop.eup %1999  ;;  %v1706_v39 = vmul.f32 %v1972_v24, %v1674_v21  ;;  %v1052_v19 = vadd.f32 1.0, %v1998_v60  ;;  %2017 = vpow2.f32 %v1015_v6  ;;  %v943_v18 = vsub.f32 0.0, %v911_v54  ;;  %v882_v35 = vpop.xlane.xlu0 %881 }
 0x25e   :  { %v2002_v20 = vpop.eup %2001  ;;  %v1704_v57 = vmul.f32 %v3388_v62, %v1672_v10  ;;  %2019 = vpow2.f32 %v1017_v61  ;;  %v912_v13 = vadd.f32 %v3334_v45, %v852_v9  ;;  %v927_v17 = vadd.f32 %v3334_v45, %v882_v35 }
 0x25f   :  { %v2004_v43 = vpop.eup %2003  ;;  %v1738_v55 = vadd.f32 %v1706_v39, %v1642_v5  ;;  %v1658_v49 = vmul.f32 %v2002_v20, %v3374_v8  ;;  %v1690_v56 = vsub.f32 1.0, %v2002_v20  ;;  %2021 = vrcp.f32 %v1052_v19  ;;  %v884_v46 = vpop.xlane.xlu1 %883 }
 0x260   :  { %v2006_v24 = vpop.eup %2005  ;;  %v1736_v21 = vadd.f32 %v1704_v57, %v1640_v11  ;;  %v1643_v6 = vmul.f32 %v2004_v43, %v3360_v36  ;;  %v1675_v54 = vsub.f32 1.0, %v2004_v43  ;;  %v979_v60 = vmul.f32 1.442695, %v943_v18 }
 0x261   :  { %v2008_v33 = vpop.eup %2007  ;;  %1771 = vst.msk [vmem:[%s3734_s4 + $0x10] sm:$0xff] %vm1768_vm0, %v1738_v55  ;;  %v1722_v35 = vmul.f32 %v1990_v51, %v1690_v56  ;;  %v1041_v62 = vadd.f32 1.0, %v2006_v24  ;;  %v944_v5 = vsub.f32 0.0, %v912_v13  ;;  %v959_v9 = vsub.f32 0.0, %v927_v17 }
 0x262   :  { %v2010_v8 = vpop.eup %2009  ;;  %1769 = vst.msk [vmem:[%s3734_s4] sm:$0xff] %vm1768_vm0, %v1736_v21  ;;  %v1707_v20 = vmul.f32 %v3398_v48, %v1675_v54  ;;  %v1042_v36 = vadd.f32 1.0, %v2008_v33  ;;  %2023 = vpow2.f32 %v979_v60  ;;  %v928_v11 = vadd.f32 %v3334_v45, %v884_v46 }
 0x263   :  { %v2012_v10 = vpop.eup %2011  ;;  %v1432_v61 = vadd.f32 %v3293_v44, %v3192_v50  ;;  %v1754_v51 = vadd.f32 %v1722_v35, %v1658_v49  ;;  %v1688_v39 = vsub.f32 1.0, %v2010_v8  ;;  %2025 = vrcp.f32 %v1041_v62 }
 0x264   :  { %v1739_v19 = vadd.f32 %v1707_v20, %v1643_v6  ;;  %v1656_v18 = vmul.f32 %v2010_v8, %v3372_v26  ;;  %v1691_v57 = vsub.f32 1.0, %v2012_v10  ;;  %2027 = vrcp.f32 %v1042_v36 }
 0x265   :  { %v2014_v13 = vpop.eup %2013  ;;  %1787 = vst.msk [vmem:[%s3734_s4 + $0x90] sm:$0xff] %vm1768_vm0, %v1754_v51  ;;  %v1720_v33 = vmul.f32 %v3401_v52, %v1688_v39  ;;  %v981_v48 = vmul.f32 1.442695, %v944_v5  ;;  %v1011_v17 = vmul.f32 1.442695, %v959_v9  ;;  %v960_v43 = vsub.f32 0.0, %v928_v11 }
 0x266   :  { %v2016_v50 = vpop.eup %2015  ;;  %2029 = vtanh.f32 %v1583_v53  ;;  %1772 = vst.msk [vmem:[%s3734_s4 + $0x18] sm:$0xff] %vm1768_vm0, %v1739_v19  ;;  %v1659_v26 = vmul.f32 %v2012_v10, %v3386_v32  ;;  %v1723_v55 = vmul.f32 %v2014_v13, %v1691_v57  ;;  %v1413_v9 = vadd.f32 %v3293_v44, %v3130_v42 }
 0x267   :  { %v2018_v49 = vpop.eup %2017  ;;  %v1752_v56 = vadd.f32 %v1720_v33, %v1656_v18  ;;  %v1673_v46 = vsub.f32 1.0, %v2016_v50  ;;  %2031 = vpow2.f32 %v981_v48  ;;  %v1013_v6 = vmul.f32 1.442695, %v960_v43 }
 0x268   :  { %v2020_v24 = vpop.eup %2019  ;;  %v1755_v21 = vadd.f32 %v1723_v55, %v1659_v26  ;;  %v1057_v52 = vadd.f32 1.0, %v2018_v49  ;;  %2033 = vpow2.f32 %v1011_v17  ;;  %v1641_v53 = vmul.f32 %v2016_v50, %v3358_v23 }
 0x269   :  { %v2022_v54 = vpop.eup %2021  ;;  %2035 = vtanh.f32 %v1432_v61  ;;  %1785 = vst.msk [vmem:[%s3734_s4 + $0x80] sm:$0xff] %vm1768_vm0, %v1752_v56  ;;  %v1705_v32 = vmul.f32 %v3396_v16, %v1673_v46  ;;  %v1058_v60 = vadd.f32 1.0, %v2020_v24  ;;  %v1580_v20 = vadd.f32 %v3338_v34, %v3234_v2 }
 0x26a   :  { %1788 = vst.msk [vmem:[%s3734_s4 + $0x98] sm:$0xff] %vm1768_vm0, %v1755_v21  ;;  %v1689_v35 = vsub.f32 1.0, %v2022_v54  ;;  %2037 = vrcp.f32 %v1057_v52  ;;  %v1657_v8 = vmul.f32 %v2022_v54, %v3381_v4  ;;  %v1414_v10 = vadd.f32 %v3293_v44, %v3138_v28 }
 0x26b   :  { %v1737_v62 = vadd.f32 %v1705_v32, %v1641_v53  ;;  %2039 = vrcp.f32 %v1058_v60  ;;  %v1429_v4 = vadd.f32 %v3293_v44, %v3186_v7  ;;  %v1581_v7 = vadd.f32 %v3338_v34, %v3236_v27 }
 0x26c   :  { %v2024_v5 = vpop.eup %2023  ;;  %v1721_v23 = vmul.f32 %v3411_v15, %v1689_v35  ;;  %2041 = vpow2.f32 %v1013_v6  ;;  %v1596_v17 = vadd.f32 %v3338_v34, %v3323_v37  ;;  %v1430_v50 = vadd.f32 %v3293_v44, %v3188_v14 }
 0x26d   :  { %v2026_v16 = vpop.eup %2025  ;;  %1770 = vst.msk [vmem:[%s3734_s4 + $0x8] sm:$0xff] %vm1768_vm0, %v1737_v62  ;;  %v1039_v36 = vadd.f32 1.0, %v2024_v5  ;;  %v1597_v55 = vadd.f32 %v3338_v34, %v3330_v12 }
 0x26e   :  { %v2028_v11 = vpop.eup %2027  ;;  %v1753_v42 = vadd.f32 %v1721_v23, %v1657_v8  ;;  %v1678_v61 = vsub.f32 1.0, %v2026_v16  ;;  %v1646_v2 = vmul.f32 %v2026_v16, %v3362_v31 }
 0x26f   :  { %v1679_v15 = vsub.f32 1.0, %v2028_v11  ;;  %2043 = vrcp.f32 %v1039_v36  ;;  %v1647_v28 = vmul.f32 %v2028_v11, %v3367_v63 }
 0x270   :  { %v2030_v51 = vpop.eup %2029  ;;  %2045 = vtanh.f32 %v1413_v9  ;;  %1786 = vst.msk [vmem:[%s3734_s4 + $0x88] sm:$0xff] %vm1768_vm0, %v1753_v42  ;;  %v1710_v39 = vmul.f32 %v3393_v3, %v1678_v61 }
 0x271   :  { %v2032_v19 = vpop.eup %2031  ;;  %2047 = vtanh.f32 %v1580_v20  ;;  %v1711_v18 = vmul.f32 %v2030_v51, %v1679_v15 }
 0x272   :  { %v2034_v57 = vpop.eup %2033  ;;  %2049 = vtanh.f32 %v1414_v10  ;;  %v1742_v13 = vadd.f32 %v1710_v39, %v1646_v2  ;;  %v1040_v33 = vadd.f32 1.0, %v2032_v19 }
 0x273   :  { %v2036_v48 = vpop.eup %2035  ;;  %2051 = vtanh.f32 %v1429_v4  ;;  %v1743_v31 = vadd.f32 %v1711_v18, %v1647_v28  ;;  %v1055_v43 = vadd.f32 1.0, %v2034_v57 }
 0x274   :  { %v3476_v3 = vpop.eup %2037  ;;  %1775 = vst.msk [vmem:[%s3734_s4 + $0x30] sm:$0xff] %vm1768_vm0, %v1742_v13  ;;  %2053 = vrcp.f32 %v1040_v33 }
 0x275   :  { %v3482_v63 = vpop.eup %2039  ;;  %1776 = vst.msk [vmem:[%s3734_s4 + $0x38] sm:$0xff] %vm1768_vm0, %v1743_v31  ;;  %2055 = vrcp.f32 %v1055_v43  ;;  %v3490_v27 = vmul.f32 %v3476_v3, %v3376_v59 }
 0x276   :  { %v2042_v37 = vpop.eup %2041  ;;  %2057 = vtanh.f32 %v1581_v7  ;;  %v3495_v26 = vmul.f32 %v3482_v63, %v2036_v48 }
 0x277   :  { %2059 = vtanh.f32 %v1596_v17  ;;  %v1056_v49 = vadd.f32 1.0, %v2042_v37 }
 0x279   :  { %v2044_v56 = vpop.eup %2043  ;;  %2061 = vrcp.f32 %v1056_v49  ;;  %v862_v46 = vpop.xlane.xlu0 %861 }
 0x27a   :  { %v2046_v24 = vpop.eup %2045  ;;  %2063 = vtanh.f32 %v1430_v50  ;;  %v1676_v59 = vsub.f32 1.0, %v2044_v56  ;;  %v917_v21 = vadd.f32 %v3334_v45, %v862_v46 }
 0x27b   :  { %v2048_v52 = vpop.eup %2047  ;;  %2065 = vtanh.f32 %v1597_v55  ;;  %v864_v14 = vpop.xlane.xlu1 %863  ;;  %v1644_v54 = vmul.f32 %v2046_v24, %v2044_v56  ;;  %v1419_v55 = vadd.f32 %v3293_v44, %v3150_v38  ;;  %v1586_v24 = vadd.f32 %v3338_v34, %v3254_v47 }
 0x27c   :  { %v2050_v6 = vpop.eup %2049  ;;  %v1708_v53 = vmul.f32 %v2048_v52, %v1676_v59  ;;  %v949_v32 = vsub.f32 0.0, %v917_v21  ;;  %v918_v60 = vadd.f32 %v3334_v45, %v864_v14  ;;  %v1420_v52 = vadd.f32 %v3293_v44, %v3160_v1 }
 0x27d   :  { %v2052_v35 = vpop.eup %2051  ;;  %v894_v12 = vpop.xlane.xlu0 %893  ;;  %v1587_v38 = vadd.f32 %v3338_v34, %v3258_v58  ;;  %v1417_v47 = vadd.f32 %v3293_v44, %v3143_v41  ;;  %v1584_v1 = vadd.f32 %v3338_v34, %v3243_v22  ;;  %v1585_v41 = vadd.f32 %v3338_v34, %v3246_v25 }
 0x27e   :  { %v2054_v62 = vpop.eup %2053  ;;  %v1740_v5 = vadd.f32 %v1708_v53, %v1644_v54  ;;  %v991_v9 = vmul.f32 1.442695, %v949_v32  ;;  %v950_v8 = vsub.f32 0.0, %v918_v60  ;;  %v1421_v53 = vadd.f32 %v3293_v44, %v3156_v40 }
 0x27f   :  { %v2056_v23 = vpop.eup %2055  ;;  %v1677_v16 = vsub.f32 1.0, %v2054_v62  ;;  %v896_v20 = vpop.xlane.xlu1 %895  ;;  %v1645_v61 = vmul.f32 %v2054_v62, %v2050_v6  ;;  %v1418_v6 = vadd.f32 %v3293_v44, %v3153_v0  ;;  %v933_v58 = vadd.f32 %v3334_v45, %v894_v12 }
 0x280   :  { %v2058_v36 = vpop.eup %2057  ;;  %1773 = vst.msk [vmem:[%s3734_s4 + $0x20] sm:$0xff] %vm1768_vm0, %v1740_v5  ;;  %v1692_v11 = vsub.f32 1.0, %v2056_v23  ;;  %2067 = vpow2.f32 %v991_v9  ;;  %v993_v10 = vmul.f32 1.442695, %v950_v8  ;;  %v1660_v51 = vmul.f32 %v2056_v23, %v2052_v35 }
 0x281   :  { %v2060_v42 = vpop.eup %2059  ;;  %v1709_v4 = vmul.f32 %v2058_v36, %v1677_v16  ;;  %v858_v15 = vpop.xlane.xlu0 %857  ;;  %v934_v0 = vadd.f32 %v3334_v45, %v896_v20  ;;  %v1422_v9 = vadd.f32 %v3293_v44, %v3168_v30  ;;  %v965_v22 = vsub.f32 0.0, %v933_v58  ;;  %v3812_v36 = vld [vmem:[#allocation5_spill] sm:$0xff] }
 0x282   :  { %v1724_v2 = vmul.f32 %v2060_v42, %v1692_v11  ;;  %2069 = vpow2.f32 %v993_v10  ;;  %v915_v39 = vadd.f32 %v3334_v45, %v858_v15  ;;  %v1423_v20 = vadd.f32 %v3293_v44, %v3812_v36  ;;  %v3813_v11 = vld [vmem:[#allocation6_spill] sm:$0xff] }
 0x283   :  { %v2062_v19 = vpop.eup %2061  ;;  %v1741_v28 = vadd.f32 %v1709_v4, %v1645_v61  ;;  %v860_v18 = vpop.xlane.xlu1 %859  ;;  %v1424_v10 = vadd.f32 %v3293_v44, %v3813_v11  ;;  %v966_v42 = vsub.f32 0.0, %v934_v0 }
 0x284   :  { %v2064_v57 = vpop.eup %2063  ;;  %v1756_v7 = vadd.f32 %v1724_v2, %v1660_v51  ;;  %v1693_v13 = vsub.f32 1.0, %v2062_v19  ;;  %v947_v33 = vsub.f32 0.0, %v915_v39  ;;  %v916_v17 = vadd.f32 %v3334_v45, %v860_v18  ;;  %v3814_v39 = vld [vmem:[#allocation7_spill] sm:$0xff] }
 0x285   :  { %v2066_v48 = vpop.eup %2065  ;;  %1774 = vst.msk [vmem:[%s3734_s4 + $0x28] sm:$0xff] %vm1768_vm0, %v1741_v28  ;;  %v1661_v31 = vmul.f32 %v2064_v57, %v2062_v19  ;;  %v890_v35 = vpop.xlane.xlu0 %889  ;;  %v1433_v19 = vadd.f32 %v3293_v44, %v3814_v39  ;;  %v1023_v28 = vmul.f32 1.442695, %v965_v22 }
 0x286   :  { %1789 = vst.msk [vmem:[%s3734_s4 + $0xa0] sm:$0xff] %vm1768_vm0, %v1756_v7  ;;  %v1725_v43 = vmul.f32 %v2066_v48, %v1693_v13  ;;  %v987_v37 = vmul.f32 1.442695, %v947_v33  ;;  %v948_v50 = vsub.f32 0.0, %v916_v17  ;;  %v931_v16 = vadd.f32 %v3334_v45, %v890_v35  ;;  %v3815_v48 = vld [vmem:[#allocation9_spill] sm:$0xff] }
 0x287   :  { %v892_v12 = vpop.xlane.xlu1 %891  ;;  %v1435_v17 = vadd.f32 %v3293_v44, %v3815_v48 }
 0x288   :  { %v1757_v49 = vadd.f32 %v1725_v43, %v1661_v31  ;;  %2071 = vpow2.f32 %v987_v37  ;;  %v989_v56 = vmul.f32 1.442695, %v948_v50  ;;  %v932_v51 = vadd.f32 %v3334_v45, %v892_v12 }
 0x289   :  { %v963_v13 = vsub.f32 0.0, %v931_v16  ;;  %v1025_v37 = vmul.f32 1.442695, %v966_v42  ;;  %v1588_v12 = vadd.f32 %v3338_v34, %v3263_v29  ;;  %v3821_v16 = vld [vmem:[#allocation16_spill] sm:$0xff] }
 0x28a   :  { %v2068_v46 = vpop.eup %2067  ;;  %1790 = vst.msk [vmem:[%s3734_s4 + $0xa8] sm:$0xff] %vm1768_vm0, %v1757_v49  ;;  %2073 = vpow2.f32 %v989_v56  ;;  %v964_v50 = vsub.f32 0.0, %v932_v51  ;;  %v3816_v49 = vld [vmem:[#allocation11_spill] sm:$0xff] }
 0x28b   :  { %v1045_v59 = vadd.f32 1.0, %v2068_v46  ;;  %2075 = vtanh.f32 %v1419_v55  ;;  %v1437_v56 = vadd.f32 %v3293_v44, %v3816_v49 }
 0x28c   :  { %v2070_v21 = vpop.eup %2069 }
 0x28d   :  { %2077 = vrcp.f32 %v1045_v59  ;;  %v1046_v14 = vadd.f32 1.0, %v2070_v21  ;;  %v1019_v59 = vmul.f32 1.442695, %v963_v13 }
 0x28e   :  { %2079 = vtanh.f32 %v1586_v24 }
 0x28f   :  { %2081 = vrcp.f32 %v1046_v14 }
 0x290   :  { %2083 = vtanh.f32 %v1420_v52  ;;  %v3817_v52 = vld [vmem:[#allocation13_spill] sm:$0xff] }
 0x291   :  { %2085 = vtanh.f32 %v1587_v38  ;;  %v1439_v38 = vadd.f32 %v3293_v44, %v3817_v52 }
 0x292   :  { %v2072_v54 = vpop.eup %2071  ;;  %2087 = vtanh.f32 %v1417_v47 }
 0x293   :  { %v1043_v32 = vadd.f32 1.0, %v2072_v54  ;;  %2089 = vtanh.f32 %v1418_v6  ;;  %v1021_v54 = vmul.f32 1.442695, %v964_v50 }
 0x294   :  { %v2074_v60 = vpop.eup %2073 }
 0x295   :  { %2091 = vrcp.f32 %v1043_v32  ;;  %v2076_v62 = vpop.eup %2075  ;;  %v1044_v5 = vadd.f32 1.0, %v2074_v60  ;;  %v3819_v60 = vld [vmem:[#allocation10_spill] sm:$0xff] }
 0x296   :  { %2093 = vtanh.f32 %v1421_v53 }
 0x297   :  { %v2078_v40 = vpop.eup %2077  ;;  %2095 = vtanh.f32 %v1584_v1  ;;  %v3818_v1 = vld [vmem:[#allocation8_spill] sm:$0xff] }
 0x298   :  { %v2080_v8 = vpop.eup %2079  ;;  %v1682_v23 = vsub.f32 1.0, %v2078_v40  ;;  %2097 = vrcp.f32 %v1044_v5  ;;  %v1650_v4 = vmul.f32 %v2078_v40, %v2076_v62  ;;  %v1434_v58 = vadd.f32 %v3293_v44, %v3818_v1  ;;  %v3820_v62 = vld [vmem:[#allocation12_spill] sm:$0xff] }
 0x299   :  { %v2082_v25 = vpop.eup %2081  ;;  %2099 = vtanh.f32 %v1585_v41  ;;  %v1436_v41 = vadd.f32 %v3293_v44, %v3819_v60  ;;  %v1438_v5 = vadd.f32 %v3293_v44, %v3820_v62 }
 0x29a   :  { %v2084_v61 = vpop.eup %2083  ;;  %v1714_v30 = vmul.f32 %v2080_v8, %v1682_v23  ;;  %v1683_v15 = vsub.f32 1.0, %v2082_v25  ;;  %2101 = vtanh.f32 %v1422_v9 }
 0x29b   :  { %v2086_v2 = vpop.eup %2085  ;;  %v1651_v57 = vmul.f32 %v2084_v61, %v2082_v25  ;;  %2103 = vtanh.f32 %v1423_v20  ;;  %v1590_v25 = vadd.f32 %v3338_v34, %v3821_v16  ;;  %v3822_v61 = vld [vmem:[#allocation15_spill] sm:$0xff] }
 0x29c   :  { %v1746_v18 = vadd.f32 %v1714_v30, %v1650_v4  ;;  %v1715_v7 = vmul.f32 %v2086_v2, %v1683_v15  ;;  %v2088_v33 = vpop.eup %2087  ;;  %2105 = vtanh.f32 %v1424_v10  ;;  %v1589_v4 = vadd.f32 %v3338_v34, %v3822_v61 }
 0x29d   :  { %v2090_v31 = vpop.eup %2089  ;;  %2107 = vtanh.f32 %v1433_v19 }
 0x29e   :  { %1779 = vst.msk [vmem:[%s3734_s4 + $0x50] sm:$0xff] %vm1768_vm0, %v1746_v18  ;;  %v1747_v43 = vadd.f32 %v1715_v7, %v1651_v57  ;;  %2109 = vpow2.f32 %v1023_v28  ;;  %v3823_v28 = vld [vmem:[#allocation17_spill] sm:$0xff] }
 0x29f   :  { %v2092_v55 = vpop.eup %2091  ;;  %2111 = vtanh.f32 %v1435_v17  ;;  %v1591_v18 = vadd.f32 %v3338_v34, %v3823_v28 }
 0x2a0   :  { %v3557_v46 = vpop.eup %2093  ;;  %1780 = vst.msk [vmem:[%s3734_s4 + $0x58] sm:$0xff] %vm1768_vm0, %v1747_v43  ;;  %v1680_v24 = vsub.f32 1.0, %v2092_v55  ;;  %2113 = vpow2.f32 %v1025_v37  ;;  %v1648_v47 = vmul.f32 %v2092_v55, %v2088_v33 }
 0x2a1   :  { %v2096_v21 = vpop.eup %2095  ;;  %2115 = vtanh.f32 %v1437_v56 }
 0x2a2   :  { %v2098_v14 = vpop.eup %2097  ;;  %v1712_v6 = vmul.f32 %v2096_v21, %v1680_v24  ;;  %2117 = vpow2.f32 %v1019_v59 }
 0x2a3   :  { %v2100_v53 = vpop.eup %2099  ;;  %v1681_v32 = vsub.f32 1.0, %v2098_v14  ;;  %2119 = vtanh.f32 %v1439_v38  ;;  %v1649_v40 = vmul.f32 %v2098_v14, %v2090_v31 }
 0x2a4   :  { %v1744_v0 = vadd.f32 %v1712_v6, %v1648_v47  ;;  %v3569_v35 = vpop.eup %2101  ;;  %2121 = vpow2.f32 %v1021_v54 }
 0x2a5   :  { %v1713_v9 = vmul.f32 %v2100_v53, %v1681_v32  ;;  %v870_v22 = vpop.xlane.xlu0 %869  ;;  %v3580_v23 = vpop.eup %2103  ;;  %2123 = vtanh.f32 %v1434_v58 }
 0x2a6   :  { %1777 = vst.msk [vmem:[%s3734_s4 + $0x40] sm:$0xff] %vm1768_vm0, %v1744_v0  ;;  %v921_v8 = vadd.f32 %v3334_v45, %v870_v22  ;;  %v3584_v11 = vpop.eup %2105  ;;  %2125 = vtanh.f32 %v1436_v41 }
 0x2a7   :  { %v1745_v36 = vadd.f32 %v1713_v9, %v1649_v40  ;;  %v872_v20 = vpop.xlane.xlu1 %871  ;;  %v3587_v42 = vpop.eup %2107  ;;  %2127 = vtanh.f32 %v1438_v5 }
 0x2a8   :  { %v953_v29 = vsub.f32 0.0, %v921_v8  ;;  %v922_v10 = vadd.f32 %v3334_v45, %v872_v20  ;;  %v2110_v15 = vpop.eup %2109  ;;  %2129 = vtanh.f32 %v1588_v12 }
 0x2a9   :  { %1778 = vst.msk [vmem:[%s3734_s4 + $0x48] sm:$0xff] %vm1768_vm0, %v1745_v36  ;;  %v902_v30 = vpop.xlane.xlu0 %901  ;;  %v3596_v19 = vpop.eup %2111  ;;  %2131 = vtanh.f32 %v1590_v25  ;;  %v1061_v31 = vadd.f32 1.0, %v2110_v15 }
 0x2aa   :  { %v999_v51 = vmul.f32 1.442695, %v953_v29  ;;  %v954_v2 = vsub.f32 0.0, %v922_v10  ;;  %v937_v39 = vadd.f32 %v3334_v45, %v902_v30  ;;  %v2114_v7 = vpop.eup %2113 }
 0x2ab   :  { %v904_v57 = vpop.xlane.xlu1 %903  ;;  %v3601_v17 = vpop.eup %2115  ;;  %v1062_v24 = vadd.f32 1.0, %v2114_v7 }
 0x2ac   :  { %2133 = vpow2.f32 %v999_v51  ;;  %v1001_v13 = vmul.f32 1.442695, %v954_v2  ;;  %v969_v33 = vsub.f32 0.0, %v937_v39  ;;  %v938_v48 = vadd.f32 %v3334_v45, %v904_v57  ;;  %v2118_v37 = vpop.eup %2117 }
 0x2ad   :  { %2135 = vtanh.f32 %v1589_v4  ;;  %v866_v43 = vpop.xlane.xlu0 %865  ;;  %v3604_v56 = vpop.eup %2119  ;;  %v1059_v6 = vadd.f32 1.0, %v2118_v37 }
 0x2ae   :  { %2137 = vpow2.f32 %v1001_v13  ;;  %v1031_v50 = vmul.f32 1.442695, %v969_v33  ;;  %v970_v55 = vsub.f32 0.0, %v938_v48  ;;  %v919_v49 = vadd.f32 %v3334_v45, %v866_v43  ;;  %v2122_v21 = vpop.eup %2121 }
 0x2af   :  { %2139 = vtanh.f32 %v1591_v18  ;;  %v868_v59 = vpop.xlane.xlu1 %867  ;;  %v3607_v47 = vpop.eup %2123  ;;  %v1060_v41 = vadd.f32 1.0, %v2122_v21 }
 0x2b0   :  { %2141 = vpow2.f32 %v1031_v50  ;;  %v1033_v52 = vmul.f32 1.442695, %v970_v55  ;;  %v951_v38 = vsub.f32 0.0, %v919_v49  ;;  %v920_v14 = vadd.f32 %v3334_v45, %v868_v59  ;;  %v3609_v53 = vpop.eup %2125 }
 0x2b1   :  { %2143 = vrcp.f32 %v1061_v31  ;;  %v898_v54 = vpop.xlane.xlu0 %897  ;;  %v3612_v60 = vpop.eup %2127 }
 0x2b2   :  { %2145 = vpow2.f32 %v1033_v52  ;;  %v995_v1 = vmul.f32 1.442695, %v951_v38  ;;  %v952_v58 = vsub.f32 0.0, %v920_v14  ;;  %v935_v32 = vadd.f32 %v3334_v45, %v898_v54  ;;  %v3614_v62 = vpop.eup %2129 }
 0x2b3   :  { %2147 = vrcp.f32 %v1062_v24  ;;  %v900_v0 = vpop.xlane.xlu1 %899  ;;  %v3617_v22 = vpop.eup %2131 }
 0x2b4   :  { %2149 = vpow2.f32 %v995_v1  ;;  %v997_v5 = vmul.f32 1.442695, %v952_v58  ;;  %v967_v40 = vsub.f32 0.0, %v935_v32  ;;  %v936_v9 = vadd.f32 %v3334_v45, %v900_v0  ;;  %v3824_v32 = vld [vmem:[#allocation14_spill] sm:$0xff] }
 0x2b5   :  { %2151 = vrcp.f32 %v1059_v6  ;;  %v1555_v12 = vpop.xlane.xlu0 %1554 }
 0x2b6   :  { %v2134_v8 = vpop.eup %2133  ;;  %2153 = vpow2.f32 %v997_v5  ;;  %v1027_v16 = vmul.f32 1.442695, %v967_v40  ;;  %v968_v25 = vsub.f32 0.0, %v936_v9  ;;  %v1598_v4 = vadd.f32 %v3338_v34, %v1555_v12 }
 0x2b7   :  { %v3619_v36 = vpop.eup %2135  ;;  %2155 = vrcp.f32 %v1060_v41  ;;  %v1049_v20 = vadd.f32 1.0, %v2134_v8  ;;  %v1557_v29 = vpop.xlane.xlu1 %1556  ;;  %v1440_v41 = vadd.f32 %v3293_v44, %v3824_v32  ;;  %v1694_v12 = vsub.f32 1.0, %v3476_v3 }
 0x2b8   :  { %v2138_v10 = vpop.eup %2137  ;;  %2157 = vpow2.f32 %v1027_v16  ;;  %v1029_v61 = vmul.f32 1.442695, %v968_v25  ;;  %v1599_v2 = vadd.f32 %v3338_v34, %v1557_v29 }
 0x2b9   :  { %v3622_v30 = vpop.eup %2139  ;;  %2159 = vrcp.f32 %v1049_v20  ;;  %v1050_v45 = vadd.f32 1.0, %v2138_v10  ;;  %v1559_v15 = vpop.xlane.xlu0 %1558 }
 0x2ba   :  { %v2142_v51 = vpop.eup %2141  ;;  %2161 = vpow2.f32 %v1029_v61  ;;  %v1600_v7 = vadd.f32 %v3338_v34, %v1559_v15 }
 0x2bb   :  { %v3625_v39 = vpop.eup %2143  ;;  %2163 = vrcp.f32 %v1050_v45  ;;  %v1065_v28 = vadd.f32 1.0, %v2142_v51  ;;  %v1561_v18 = vpop.xlane.xlu1 %1560 }
 0x2bc   :  { %v2146_v57 = vpop.eup %2145  ;;  %2165 = vtanh.f32 %v1598_v4  ;;  %v1601_v43 = vadd.f32 %v3338_v34, %v1561_v18  ;;  %v1695_v4 = vsub.f32 1.0, %v3482_v63 }
 0x2bd   :  { %v3628_v13 = vpop.eup %2147  ;;  %2167 = vrcp.f32 %v1065_v28  ;;  %v1066_v33 = vadd.f32 1.0, %v2146_v57  ;;  %v1563_v48 = vpop.xlane.xlu0 %1562 }
 0x2be   :  { %v2150_v31 = vpop.eup %2149  ;;  %2169 = vtanh.f32 %v1599_v2  ;;  %v1602_v24 = vadd.f32 %v3338_v34, %v1563_v48 }
 0x2bf   :  { %v2152_v37 = vpop.eup %2151  ;;  %2171 = vrcp.f32 %v1066_v33  ;;  %v1047_v50 = vadd.f32 1.0, %v2150_v31  ;;  %v1565_v55 = vpop.xlane.xlu1 %1564 }
 0x2c0   :  { %v2154_v49 = vpop.eup %2153  ;;  %2173 = vtanh.f32 %v1600_v7  ;;  %v1603_v14 = vadd.f32 %v3338_v34, %v1565_v55  ;;  %v1696_v57 = vsub.f32 1.0, %v2152_v37 }
 0x2c1   :  { %v3632_v59 = vpop.eup %2155  ;;  %2175 = vrcp.f32 %v1047_v50  ;;  %v1048_v21 = vadd.f32 1.0, %v2154_v49  ;;  %v1567_v52 = vpop.xlane.xlu0 %1566 }
 0x2c2   :  { %v2158_v38 = vpop.eup %2157  ;;  %2177 = vtanh.f32 %v1601_v43  ;;  %v1604_v5 = vadd.f32 %v3338_v34, %v1567_v52  ;;  %v1697_v48 = vsub.f32 1.0, %v3632_v59 }
 0x2c3   :  { %v2160_v6 = vpop.eup %2159  ;;  %2179 = vrcp.f32 %v1048_v21  ;;  %v1063_v54 = vadd.f32 1.0, %v2158_v38  ;;  %v1569_v1 = vpop.xlane.xlu1 %1568 }
 0x2c4   :  { %v2162_v58 = vpop.eup %2161  ;;  %v1686_v0 = vsub.f32 1.0, %v2160_v6  ;;  %2181 = vtanh.f32 %v1602_v24  ;;  %v1605_v8 = vadd.f32 %v3338_v34, %v1569_v1  ;;  %v1654_v20 = vmul.f32 %v2160_v6, %v3580_v23 }
 0x2c5   :  { %v2164_v40 = vpop.eup %2163  ;;  %2183 = vrcp.f32 %v1063_v54  ;;  %v1064_v9 = vadd.f32 1.0, %v2162_v58  ;;  %v1571_v16 = vpop.xlane.xlu0 %1570  ;;  %v1666_v6 = vmul.f32 %v3625_v39, %v3596_v19  ;;  %v1667_v19 = vmul.f32 %v3628_v13, %v3609_v53 }
 0x2c6   :  { %v2166_v25 = vpop.eup %2165  ;;  %v1718_v29 = vmul.f32 %v3617_v22, %v1686_v0  ;;  %v1687_v10 = vsub.f32 1.0, %v2164_v40  ;;  %2185 = vtanh.f32 %v1603_v14  ;;  %v1606_v45 = vadd.f32 %v3338_v34, %v1571_v16 }
 0x2c7   :  { %v3642_v44 = vpop.eup %2167  ;;  %2187 = vrcp.f32 %v1064_v9  ;;  %v1726_v61 = vmul.f32 %v2166_v25, %v1694_v12  ;;  %v1655_v51 = vmul.f32 %v2164_v40, %v3584_v11  ;;  %v1573_v23 = vpop.xlane.xlu1 %1572  ;;  %v1664_v11 = vmul.f32 %v2152_v37, %v3587_v42 }
 0x2c8   :  { %v2170_v15 = vpop.eup %2169  ;;  %v1750_v3 = vadd.f32 %v1718_v29, %v1654_v20  ;;  %v1719_v2 = vmul.f32 %v3622_v30, %v1687_v10  ;;  %2189 = vtanh.f32 %v1604_v5  ;;  %v1607_v31 = vadd.f32 %v3338_v34, %v1573_v23 }
 0x2c9   :  { %v3648_v28 = vpop.eup %2171  ;;  %v1758_v22 = vadd.f32 %v1726_v61, %v3490_v27  ;;  %v1727_v18 = vmul.f32 %v2170_v15, %v1695_v4  ;;  %2191 = vtanh.f32 %v1605_v8  ;;  %v1698_v37 = vsub.f32 1.0, %v3625_v39 }
 0x2ca   :  { %v2174_v7 = vpop.eup %2173  ;;  %1783 = vst.msk [vmem:[%s3734_s4 + $0x70] sm:$0xff] %vm1768_vm0, %v1750_v3  ;;  %v1751_v63 = vadd.f32 %v1719_v2, %v1655_v51  ;;  %2193 = vtanh.f32 %v1606_v45  ;;  %v1665_v34 = vmul.f32 %v3632_v59, %v3607_v47  ;;  %v1699_v47 = vsub.f32 1.0, %v3628_v13 }
 0x2cb   :  { %v2176_v30 = vpop.eup %2175  ;;  %1791 = vst.msk [vmem:[%s3734_s4 + $0xb0] sm:$0xff] %vm1768_vm0, %v1758_v22  ;;  %v1759_v27 = vadd.f32 %v1727_v18, %v3495_v26  ;;  %v1728_v33 = vmul.f32 %v2174_v7, %v1696_v57  ;;  %2195 = vtanh.f32 %v1440_v41  ;;  %v1702_v53 = vsub.f32 1.0, %v3642_v44 }
 0x2cc   :  { %v2178_v43 = vpop.eup %2177  ;;  %1784 = vst.msk [vmem:[%s3734_s4 + $0x78] sm:$0xff] %vm1768_vm0, %v1751_v63  ;;  %v1684_v42 = vsub.f32 1.0, %v2176_v30  ;;  %2197 = vtanh.f32 %v1607_v31  ;;  %v1652_v24 = vmul.f32 %v2176_v30, %v3557_v46  ;;  %v1703_v61 = vsub.f32 1.0, %v3648_v28 }
 0x2cd   :  { %v2180_v50 = vpop.eup %2179  ;;  %1792 = vst.msk [vmem:[%s3734_s4 + $0xb8] sm:$0xff] %vm1768_vm0, %v1759_v27  ;;  %v1760_v26 = vadd.f32 %v1728_v33, %v1664_v11  ;;  %v1729_v55 = vmul.f32 %v2178_v43, %v1697_v48 }
 0x2ce   :  { %v2182_v49 = vpop.eup %2181  ;;  %v1716_v21 = vmul.f32 %v3614_v62, %v1684_v42  ;;  %v1685_v52 = vsub.f32 1.0, %v2180_v50  ;;  %v1653_v46 = vmul.f32 %v2180_v50, %v3569_v35 }
 0x2cf   :  { %v2184_v38 = vpop.eup %2183  ;;  %1793 = vst.msk [vmem:[%s3734_s4 + $0xc0] sm:$0xff] %vm1768_vm0, %v1760_v26  ;;  %v1761_v14 = vadd.f32 %v1729_v55, %v1665_v34  ;;  %v1730_v54 = vmul.f32 %v2182_v49, %v1698_v37 }
 0x2d0   :  { %v2186_v59 = vpop.eup %2185  ;;  %v1748_v1 = vadd.f32 %v1716_v21, %v1652_v24  ;;  %v1717_v62 = vmul.f32 %v3619_v36, %v1685_v52  ;;  %v1700_v58 = vsub.f32 1.0, %v2184_v38  ;;  %v1668_v9 = vmul.f32 %v2184_v38, %v3601_v17 }
 0x2d1   :  { %v2188_v32 = vpop.eup %2187  ;;  %1794 = vst.msk [vmem:[%s3734_s4 + $0xc8] sm:$0xff] %vm1768_vm0, %v1761_v14  ;;  %v1762_v41 = vadd.f32 %v1730_v54, %v1666_v6  ;;  %v1731_v39 = vmul.f32 %v2186_v59, %v1699_v47  ;;  %v1670_v17 = vmul.f32 %v3642_v44, %v3604_v56 }
 0x2d2   :  { %v2190_v0 = vpop.eup %2189  ;;  %1781 = vst.msk [vmem:[%s3734_s4 + $0x60] sm:$0xff] %vm1768_vm0, %v1748_v1  ;;  %v1749_v35 = vadd.f32 %v1717_v62, %v1653_v46  ;;  %v1701_v36 = vsub.f32 1.0, %v2188_v32  ;;  %v1669_v8 = vmul.f32 %v2188_v32, %v3612_v60 }
 0x2d3   :  { %v2192_v5 = vpop.eup %2191  ;;  %1795 = vst.msk [vmem:[%s3734_s4 + $0xd0] sm:$0xff] %vm1768_vm0, %v1762_v41  ;;  %v1763_v40 = vadd.f32 %v1731_v39, %v1667_v19  ;;  %v1732_v12 = vmul.f32 %v2190_v0, %v1700_v58 }
 0x2d4   :  { %v2194_v13 = vpop.eup %2193  ;;  %1782 = vst.msk [vmem:[%s3734_s4 + $0x68] sm:$0xff] %vm1768_vm0, %v1749_v35  ;;  %v1733_v16 = vmul.f32 %v2192_v5, %v1701_v36 }
 0x2d5   :  { %1796 = vst.msk [vmem:[%s3734_s4 + $0xd8] sm:$0xff] %vm1768_vm0, %v1763_v40  ;;  %v1764_v25 = vadd.f32 %v1732_v12, %v1668_v9  ;;  %v1734_v20 = vmul.f32 %v2194_v13, %v1702_v53  ;;  %v2196_v29 = vpop.eup %2195 }
 0x2d6   :  { %v1765_v10 = vadd.f32 %v1733_v16, %v1669_v8  ;;  %v2198_v4 = vpop.eup %2197  ;;  %v1671_v45 = vmul.f32 %v2196_v29, %v3648_v28 }
 0x2d7   :  { %1797 = vst.msk [vmem:[%s3734_s4 + $0xe0] sm:$0xff] %vm1768_vm0, %v1764_v25  ;;  %v1766_v60 = vadd.f32 %v1734_v20, %v1670_v17  ;;  %v1735_v56 = vmul.f32 %v2198_v4, %v1703_v61 }
 0x2d8   :  { %1798 = vst.msk [vmem:[%s3734_s4 + $0xe8] sm:$0xff] %vm1768_vm0, %v1765_v10 }
 0x2d9   :  { %1799 = vst.msk [vmem:[%s3734_s4 + $0xf0] sm:$0xff] %vm1768_vm0, %v1766_v60  ;;  %v1767_v44 = vadd.f32 %v1735_v56, %v1671_v45 }
 0x2db   :  { %1800 = vst.msk [vmem:[%s3734_s4 + $0xf8] sm:$0xff] %vm1768_vm0, %v1767_v44 }
 0x2dc   :  { %1805 = vsyncpa [#allocation3], 1 }

</bundles_post_ra>
